<compile_context>
chip_gen: v5e
topology: v5e:2x2
jax: 0.10.0
libtpu: 0.0.40
codegen_flags: <defaults>
</compile_context>

<pallas_src>
import functools

import jax
import jax.numpy as jnp
from jax import lax
from jax.experimental import pallas as pl
from jax.experimental.pallas import tpu as pltpu

LN_EPS = 1e-5        # torch.nn.LayerNorm default
NEG_INF = -1e30      # plain Python float (NOT a jnp array -> not a captured constant)


def attn_readout_kernel(x_ref, u_ref, mask_ref, gamma_ref, beta_ref,
                        wkv_ref, w12_ref, wlog_ref,
                        score_ref, denoised_ref, *, o_real):
    TB, L, D = x_ref.shape
    O_pad = score_ref.shape[-1]
    rows = TB * L

    # Flatten (TB, L, D) -> (TB*L, D); layout-free because L % 8 == 0.
    x = x_ref[...].reshape(rows, D).astype(jnp.float32)
    m = mask_ref[...].reshape(rows, 1).astype(jnp.float32)

    # ---- LayerNorm over feature dim (one-pass statistics) ----
    mu = jnp.mean(x, axis=-1, keepdims=True)
    ex2 = jnp.mean(x * x, axis=-1, keepdims=True)
    var = ex2 - mu * mu
    xn = (x - mu) * lax.rsqrt(var + LN_EPS)
    xn = xn * gamma_ref[...] + beta_ref[...]

    # ---- mask (binary 0/1, so the repeated mask multiply in the module is idempotent) ----
    # TODO(synk): feat_drop implemented as identity (p=0.0 / eval mode)
    xm = xn * m
    xm_bf = xm.astype(jnp.bfloat16)

    # ---- fused key/value projection: one N=2D bf16 matmul, f32 accumulate ----
    kv = jnp.dot(xm_bf, wkv_ref[...], preferred_element_type=jnp.float32)   # (rows, 2D)
    kv = kv * m
    key = kv[:, :D]                                                          # (rows, D)
    val = kv[:, D:]                                                          # (rows, D)

    # key * broadcast(u) per sequence
    u = u_ref[...].astype(jnp.float32)                                       # (TB, 1, D)
    mul = (key.reshape(TB, L, D) * u).reshape(rows, D)

    # ---- attention logits: folded concat matmul, single K=2D bf16 matmul ----
    km = jnp.concatenate([key.astype(jnp.bfloat16), mul.astype(jnp.bfloat16)], axis=-1)
    logits = jnp.dot(km, wlog_ref[...], preferred_element_type=jnp.float32)  # (rows, O_pad)

    # per-sequence bias u @ (W1 - W2), computed in-kernel (tiny TBxDxO_pad matmul)
    u2 = u.reshape(TB, D).astype(jnp.bfloat16)
    ubias = jnp.dot(u2, w12_ref[...], preferred_element_type=jnp.float32)    # (TB, O_pad)

    logits = (logits.reshape(TB, L, O_pad) + ubias.reshape(TB, 1, O_pad)).reshape(rows, O_pad)
    logits = logits * m
    # padded lane columns must not participate in the softmax (f32 sentinel kept in f32)
    col = lax.broadcasted_iota(jnp.int32, (rows, O_pad), 1)
    logits = jnp.where(col < o_real, logits, NEG_INF)

    # ---- softmax over output_dim (lane axis), f32 ----
    lmax = jnp.max(logits, axis=-1, keepdims=True)
    e = jnp.exp(logits - lmax)
    score = e * pl.reciprocal(jnp.sum(e, axis=-1, keepdims=True), approx=True)
    score3 = score.reshape(TB, L, O_pad)
    score_ref[...] = score3.astype(score_ref.dtype)

    # ---- get_denoised_items_emb: per-sequence softmax over L on score column 0 ----
    s0 = score3[:, :, 0:1]                                                   # (TB, L, 1)
    smax = jnp.max(s0, axis=1, keepdims=True)
    es = jnp.exp(s0 - smax)
    s0n = es * pl.reciprocal(jnp.sum(es, axis=1, keepdims=True), approx=True)

    denoised = s0n * val.reshape(TB, L, D)   # final *mask dropped: val already masked
    denoised_ref[...] = denoised.astype(denoised_ref.dtype)


def _vmem_estimate(tb, L, D, O_pad):
    """Generous per-step VMEM estimate: double-buffered blocks + weights + f32 temps."""
    rows = tb * L
    f32, bf16 = 4, 2
    blocks = 2 * (rows * D * f32           # item_seq_emb block
                  + tb * D * f32           # user emb block
                  + rows * 128 * f32       # mask block (lane-padded)
                  + rows * O_pad * f32     # score out block
                  + rows * D * f32)        # denoised out block
    weights = 2 * (D * 2 * D * bf16        # wkv
                   + D * O_pad * bf16      # w12
                   + 2 * D * O_pad * bf16  # wlog
                   + 2 * D * f32)          # gamma + beta
    temps = rows * (10 * D + 4 * O_pad) * f32
    return blocks + weights + temps


def _choose_tb(B, L, D, O_pad, *, num_cores=1, target_rows=1024,
               vmem_budget=24 * 1024 * 1024):
    """Sequences per grid step: fill ~target_rows MXU rows, fit VMEM budget.

    Only enforce a multi-step grid when there is more than one TensorCore (v7x);
    on single-TC chips (v5e/v6e) a grid of 1 is strictly cheaper."""
    tb = max(1, min(B, max(1, target_rows // max(L, 1))))
    if num_cores > 1 and B >= num_cores:
        tb = min(tb, max(1, B // num_cores))
    while tb > 1 and _vmem_estimate(tb, L, D, O_pad) > vmem_budget:
        tb -= 1
    return tb


def _detect_num_cores():
    try:
        return max(1, int(getattr(jax.devices()[0], "num_cores", 1)))
    except Exception:
        return 1


def attn_readout(x, u, mask, gamma, beta, wkey_t, wval_t, wattn_t, *,
                 tb=None, num_cores=None):
    """x: (B,L,D), u: (B,D), mask: (B,L,1) binary, weights pre-transposed ([in, out]).

    Returns (score (B,L,O), denoised (B,L,D))."""
    B, L, D = x.shape
    O = wattn_t.shape[1]
    assert wkey_t.shape == (D, D) and wval_t.shape == (D, D), \
        "hidden_dim must equal input_dim (required by the elementwise ops in the module)"
    assert wattn_t.shape[0] == 4 * D
    assert L % 8 == 0, "L must be a multiple of 8 for layout-free (TB,L,D)<->(rows,D) reshapes"
    assert D % 128 == 0, "feature dim must be lane aligned (multiple of 128)"
    O_pad = max(128, ((O + 127) // 128) * 128)

    if num_cores is None:
        num_cores = _detect_num_cores()
    if tb is None:
        tb = _choose_tb(B, L, D, O_pad, num_cores=num_cores)

    # pad B to a multiple of tb (padded sequences are fully masked-out and sliced off)
    B_pad = ((B + tb - 1) // tb) * tb
    if B_pad != B:
        pb = B_pad - B
        x = jnp.pad(x, ((0, pb), (0, 0), (0, 0)))
        u = jnp.pad(u, ((0, pb), (0, 0)))
        mask = jnp.pad(mask, ((0, pb), (0, 0), (0, 0)))
    grid_b = B_pad // tb

    # ---- algebraic fold of the concat matmul (once, outside the kernel) ----
    w0 = wattn_t[0:D]
    w1 = wattn_t[D:2 * D]
    w2 = wattn_t[2 * D:3 * D]
    w3 = wattn_t[3 * D:4 * D]
    pad_o = [(0, 0), (0, O_pad - O)]
    # [key | key*u] multiplies [[W0+W2]; [W3]]; u multiplies (W1-W2)
    wlog = jnp.pad(jnp.concatenate([w0 + w2, w3], axis=0), pad_o).astype(jnp.bfloat16)  # (2D, O_pad)
    w12 = jnp.pad(w1 - w2, pad_o).astype(jnp.bfloat16)                                  # (D, O_pad)
    wkv = jnp.concatenate([wkey_t, wval_t], axis=1).astype(jnp.bfloat16)                # (D, 2D)

    u3 = u.reshape(B_pad, 1, D)
    gamma2 = gamma.reshape(1, D)
    beta2 = beta.reshape(1, D)

    kernel = functools.partial(attn_readout_kernel, o_real=O)

    est = _vmem_estimate(tb, L, D, O_pad)
    vmem_limit = int(min(max(2 * est, 32 * 1024 * 1024), 56 * 1024 * 1024))

    score_pad, denoised = pl.pallas_call(
        kernel,
        out_shape=(jax.ShapeDtypeStruct((B_pad, L, O_pad), jnp.float32),
                   jax.ShapeDtypeStruct((B_pad, L, D), jnp.float32)),
        grid_spec=pltpu.PrefetchScalarGridSpec(
            num_scalar_prefetch=0,
            grid=(grid_b,),
            in_specs=[
                pl.BlockSpec((tb, L, D), lambda b: (b, 0, 0)),       # item_seq_emb
                pl.BlockSpec((tb, 1, D), lambda b: (b, 0, 0)),       # user_interest_fusion_emb
                pl.BlockSpec((tb, L, 1), lambda b: (b, 0, 0)),       # mask
                pl.BlockSpec((1, D), lambda b: (0, 0)),              # ln gamma
                pl.BlockSpec((1, D), lambda b: (0, 0)),              # ln beta
                pl.BlockSpec((D, 2 * D), lambda b: (0, 0)),          # [Wk^T | Wv^T] bf16
                pl.BlockSpec((D, O_pad), lambda b: (0, 0)),          # (W1 - W2) bf16, padded
                pl.BlockSpec((2 * D, O_pad), lambda b: (0, 0)),      # [[W0+W2];[W3]] bf16, padded
            ],
            out_specs=(
                pl.BlockSpec((tb, L, O_pad), lambda b: (b, 0, 0)),   # score (lane dense)
                pl.BlockSpec((tb, L, D), lambda b: (b, 0, 0)),       # denoised_items_emb
            ),
        ),
        compiler_params=pltpu.CompilerParams(
            dimension_semantics=("parallel",),
            vmem_limit_bytes=vmem_limit),
    )(x, u3, mask, gamma2, beta2, wkv, w12, wlog)

    return score_pad[:B, :, :O], denoised[:B]


def attn_readout_ref(x, u, mask, gamma, beta, wkey_t, wval_t, wattn_t):
    """Pure-JAX f32 reference mirroring the PyTorch forward (full concat path)."""
    mu = jnp.mean(x, -1, keepdims=True)
    var = jnp.mean((x - mu) ** 2, -1, keepdims=True)
    xn = (x - mu) / jnp.sqrt(var + LN_EPS) * gamma.reshape(1, 1, -1) + beta.reshape(1, 1, -1)
    xm = xn * mask
    xm = xm * mask
    key = (xm @ wkey_t) * mask
    ue = jnp.broadcast_to(u[:, None, :], key.shape)
    cat = jnp.concatenate([key, ue, key - ue, key * ue], axis=-1)
    logits = (cat @ wattn_t) * mask
    score = jax.nn.softmax(logits, axis=-1)
    s0 = jax.nn.softmax(score[:, :, 0], axis=-1)[..., None]
    val = (xm @ wval_t) * mask
    denoised = s0 * val * mask
    return score, denoised


if __name__ == "__main__":
    B, L = 8, 16
    input_dim = hidden_dim = 128   # must be equal (see layout comment)
    output_dim = 4

    key = jax.random.PRNGKey(0)
    k = jax.random.split(key, 5)

    x = jax.random.normal(k[0], (B, L, input_dim), jnp.float32)
    u = jax.random.normal(k[1], (B, hidden_dim), jnp.float32)
    lens = jnp.array([16, 12, 8, 16, 4, 16, 9, 3])
    mask = (jnp.arange(L)[None, :] < lens[:, None]).astype(jnp.float32)[..., None]  # (B,L,1)

    gamma = jnp.ones((input_dim,), jnp.float32)
    beta = jnp.zeros((input_dim,), jnp.float32)
    wkey_t = jax.random.normal(k[2], (input_dim, hidden_dim), jnp.float32) / jnp.sqrt(1.0 * input_dim)
    wval_t = jax.random.normal(k[3], (input_dim, hidden_dim), jnp.float32) / jnp.sqrt(1.0 * input_dim)
    wattn_t = jax.random.normal(k[4], (4 * hidden_dim, output_dim), jnp.float32) / jnp.sqrt(4.0 * hidden_dim)

    score, denoised = attn_readout(x, u, mask, gamma, beta, wkey_t, wval_t, wattn_t)
    jax.block_until_ready((score, denoised))

    score_r, denoised_r = attn_readout_ref(x, u, mask, gamma, beta, wkey_t, wval_t, wattn_t)
    assert score.shape == score_r.shape and denoised.shape == denoised_r.shape
    # tolerance reflects bf16 MXU operands (f32 accumulate), folded concat weights and
    # pl.reciprocal(approx=True) softmax denominators vs the exact f32 reference
    assert jnp.allclose(score, score_r, atol=2e-2, rtol=2e-2), "score mismatch"
    assert jnp.allclose(denoised, denoised_r, atol=1e-2, rtol=1e-2), "denoised mismatch"

    print("KERNEL_OK")
</pallas_src>

<mosaic_0001>
module attributes {stable_mosaic.version = 11 : i64} {
  func.func @attn_readout_kernel(%arg0: i32, %arg1: memref<8x16x128xf32, #tpu.memory_space<vmem>>, %arg2: memref<8x1x128xf32, #tpu.memory_space<vmem>>, %arg3: memref<8x16x1xf32, #tpu.memory_space<vmem>>, %arg4: memref<1x128xf32, #tpu.memory_space<vmem>>, %arg5: memref<1x128xf32, #tpu.memory_space<vmem>>, %arg6: memref<128x256xbf16, #tpu.memory_space<vmem>>, %arg7: memref<128x128xbf16, #tpu.memory_space<vmem>>, %arg8: memref<256x128xbf16, #tpu.memory_space<vmem>>, %arg9: memref<8x16x128xf32, #tpu.memory_space<vmem>>, %arg10: memref<8x16x128xf32, #tpu.memory_space<vmem>>) attributes {dimension_semantics = [#tpu.dimension_semantics<parallel>], iteration_bounds = array<i64: 1>, scalar_prefetch = 0 : i64, scratch_operands = 0 : i64, tpu.core_type = #tpu.core_type<tc>, window_params = [{transform_indices = @transform_0, window_bounds = array<i64: 8, 16, 128>}, {transform_indices = @transform_1, window_bounds = array<i64: 8, 1, 128>}, {transform_indices = @transform_2, window_bounds = array<i64: 8, 16, 1>}, {pipeline_mode = #tpu.pipeline_mode<synchronous>, transform_indices = @transform_3, window_bounds = array<i64: 1, 128>}, {pipeline_mode = #tpu.pipeline_mode<synchronous>, transform_indices = @transform_4, window_bounds = array<i64: 1, 128>}, {pipeline_mode = #tpu.pipeline_mode<synchronous>, transform_indices = @transform_5, window_bounds = array<i64: 128, 256>}, {pipeline_mode = #tpu.pipeline_mode<synchronous>, transform_indices = @transform_6, window_bounds = array<i64: 128, 128>}, {pipeline_mode = #tpu.pipeline_mode<synchronous>, transform_indices = @transform_7, window_bounds = array<i64: 256, 128>}, {transform_indices = @transform_8, window_bounds = array<i64: 8, 16, 128>}, {transform_indices = @transform_9, window_bounds = array<i64: 8, 16, 128>}]} {
    %c0 = arith.constant 0 : index
    %c0_0 = arith.constant 0 : index
    %c0_1 = arith.constant 0 : index
    %0 = vector.load %arg1[%c0, %c0_0, %c0_1] : memref<8x16x128xf32, #tpu.memory_space<vmem>>, vector<8x16x128xf32>
    %1 = vector.shape_cast %0 : vector<8x16x128xf32> to vector<128x128xf32>
    %c0_2 = arith.constant 0 : index
    %c0_3 = arith.constant 0 : index
    %c0_4 = arith.constant 0 : index
    %2 = vector.load %arg3[%c0_2, %c0_3, %c0_4] : memref<8x16x1xf32, #tpu.memory_space<vmem>>, vector<8x16x1xf32>
    %3 = vector.shape_cast %2 : vector<8x16x1xf32> to vector<128x1xf32>
    %cst = arith.constant dense<0.000000e+00> : vector<128xf32>
    %4 = vector.multi_reduction <add>, %1, %cst [1] : vector<128x128xf32> to vector<128xf32>
    %5 = vector.shape_cast %4 : vector<128xf32> to vector<128x1xf32>
    %cst_5 = arith.constant 1.280000e+02 : f32
    %6 = vector.broadcast %cst_5 : f32 to vector<128x1xf32>
    %7 = arith.divf %5, %6 : vector<128x1xf32>
    %8 = arith.mulf %1, %1 : vector<128x128xf32>
    %cst_6 = arith.constant dense<0.000000e+00> : vector<128xf32>
    %9 = vector.multi_reduction <add>, %8, %cst_6 [1] : vector<128x128xf32> to vector<128xf32>
    %10 = vector.shape_cast %9 : vector<128xf32> to vector<128x1xf32>
    %cst_7 = arith.constant 1.280000e+02 : f32
    %11 = vector.broadcast %cst_7 : f32 to vector<128x1xf32>
    %12 = arith.divf %10, %11 : vector<128x1xf32>
    %13 = arith.mulf %7, %7 : vector<128x1xf32>
    %14 = arith.subf %12, %13 : vector<128x1xf32>
    %15 = vector.broadcast %7 : vector<128x1xf32> to vector<128x128xf32>
    %16 = arith.subf %1, %15 : vector<128x128xf32>
    %cst_8 = arith.constant 9.99999974E-6 : f32
    %17 = vector.broadcast %cst_8 : f32 to vector<128x1xf32>
    %18 = arith.addf %14, %17 : vector<128x1xf32>
    %19 = math.rsqrt %18 : vector<128x1xf32>
    %20 = vector.broadcast %19 : vector<128x1xf32> to vector<128x128xf32>
    %21 = arith.mulf %16, %20 : vector<128x128xf32>
    %c0_9 = arith.constant 0 : index
    %c0_10 = arith.constant 0 : index
    %22 = vector.load %arg4[%c0_9, %c0_10] : memref<1x128xf32, #tpu.memory_space<vmem>>, vector<1x128xf32>
    %23 = vector.broadcast %22 : vector<1x128xf32> to vector<128x128xf32>
    %24 = arith.mulf %21, %23 : vector<128x128xf32>
    %c0_11 = arith.constant 0 : index
    %c0_12 = arith.constant 0 : index
    %25 = vector.load %arg5[%c0_11, %c0_12] : memref<1x128xf32, #tpu.memory_space<vmem>>, vector<1x128xf32>
    %26 = vector.broadcast %25 : vector<1x128xf32> to vector<128x128xf32>
    %27 = arith.addf %24, %26 : vector<128x128xf32>
    %28 = vector.broadcast %3 : vector<128x1xf32> to vector<128x128xf32>
    %29 = arith.mulf %27, %28 : vector<128x128xf32>
    %30 = arith.truncf %29 : vector<128x128xf32> to vector<128x128xbf16>
    %c0_13 = arith.constant 0 : index
    %c0_14 = arith.constant 0 : index
    %31 = vector.load %arg6[%c0_13, %c0_14] : memref<128x256xbf16, #tpu.memory_space<vmem>>, vector<128x256xbf16>
    %cst_15 = arith.constant dense<0.000000e+00> : vector<128x256xf32>
    %32 = tpu.matmul %30, %31, %cst_15 {dimension_numbers = #tpu.dot_dimension_numbers<[1], [0], [0], [1], [0, 0, 1, 1], [], []>} : vector<128x128xbf16>, vector<128x256xbf16>, vector<128x256xf32> -> vector<128x256xf32>
    %33 = vector.broadcast %3 : vector<128x1xf32> to vector<128x256xf32>
    %34 = arith.mulf %32, %33 : vector<128x256xf32>
    %35 = vector.extract_strided_slice %34 {offsets = [0, 0], sizes = [128, 128], strides = [1, 1]} : vector<128x256xf32> to vector<128x128xf32>
    %36 = vector.extract_strided_slice %34 {offsets = [0, 128], sizes = [128, 128], strides = [1, 1]} : vector<128x256xf32> to vector<128x128xf32>
    %c0_16 = arith.constant 0 : index
    %c0_17 = arith.constant 0 : index
    %c0_18 = arith.constant 0 : index
    %37 = vector.load %arg2[%c0_16, %c0_17, %c0_18] : memref<8x1x128xf32, #tpu.memory_space<vmem>>, vector<8x1x128xf32>
    %38 = vector.shape_cast %35 : vector<128x128xf32> to vector<8x16x128xf32>
    %39 = vector.broadcast %37 : vector<8x1x128xf32> to vector<8x16x128xf32>
    %40 = arith.mulf %38, %39 : vector<8x16x128xf32>
    %41 = vector.shape_cast %40 : vector<8x16x128xf32> to vector<128x128xf32>
    %42 = arith.truncf %35 : vector<128x128xf32> to vector<128x128xbf16>
    %43 = arith.truncf %41 : vector<128x128xf32> to vector<128x128xbf16>
    %44 = tpu.concatenate %42, %43 in 1 : vector<128x128xbf16>, vector<128x128xbf16> -> vector<128x256xbf16>
    %c0_19 = arith.constant 0 : index
    %c0_20 = arith.constant 0 : index
    %45 = vector.load %arg8[%c0_19, %c0_20] : memref<256x128xbf16, #tpu.memory_space<vmem>>, vector<256x128xbf16>
    %cst_21 = arith.constant dense<0.000000e+00> : vector<128x128xf32>
    %46 = tpu.matmul %44, %45, %cst_21 {dimension_numbers = #tpu.dot_dimension_numbers<[1], [0], [0], [1], [0, 0, 1, 1], [], []>} : vector<128x256xbf16>, vector<256x128xbf16>, vector<128x128xf32> -> vector<128x128xf32>
    %47 = vector.shape_cast %37 : vector<8x1x128xf32> to vector<8x128xf32>
    %48 = arith.truncf %47 : vector<8x128xf32> to vector<8x128xbf16>
    %c0_22 = arith.constant 0 : index
    %c0_23 = arith.constant 0 : index
    %49 = vector.load %arg7[%c0_22, %c0_23] : memref<128x128xbf16, #tpu.memory_space<vmem>>, vector<128x128xbf16>
    %cst_24 = arith.constant dense<0.000000e+00> : vector<8x128xf32>
    %50 = tpu.matmul %48, %49, %cst_24 {dimension_numbers = #tpu.dot_dimension_numbers<[1], [0], [0], [1], [0, 0, 1, 1], [], []>} : vector<8x128xbf16>, vector<128x128xbf16>, vector<8x128xf32> -> vector<8x128xf32>
    %51 = vector.shape_cast %46 : vector<128x128xf32> to vector<8x16x128xf32>
    %52 = vector.shape_cast %50 : vector<8x128xf32> to vector<8x1x128xf32>
    %53 = vector.broadcast %52 : vector<8x1x128xf32> to vector<8x16x128xf32>
    %54 = arith.addf %51, %53 : vector<8x16x128xf32>
    %55 = vector.shape_cast %54 : vector<8x16x128xf32> to vector<128x128xf32>
    %56 = vector.broadcast %3 : vector<128x1xf32> to vector<128x128xf32>
    %57 = arith.mulf %55, %56 : vector<128x128xf32>
    %58 = tpu.iota {dimensions = array<i32: 1>} : vector<128x128xi32>
    %c4_i32 = arith.constant 4 : i32
    %59 = vector.broadcast %c4_i32 : i32 to vector<128x128xi32>
    %60 = arith.cmpi slt, %58, %59 : vector<128x128xi32>
    %cst_25 = arith.constant -1.000000e+30 : f32
    %61 = vector.broadcast %cst_25 : f32 to vector<128x128xf32>
    %62 = arith.select %60, %57, %61 : vector<128x128xi1>, vector<128x128xf32>
    %cst_26 = arith.constant dense<0xFF800000> : vector<128xf32>
    %63 = vector.multi_reduction <maximumf>, %62, %cst_26 [1] : vector<128x128xf32> to vector<128xf32>
    %64 = vector.shape_cast %63 : vector<128xf32> to vector<128x1xf32>
    %65 = vector.broadcast %64 : vector<128x1xf32> to vector<128x128xf32>
    %66 = arith.subf %62, %65 : vector<128x128xf32>
    %67 = math.exp %66 : vector<128x128xf32>
    %cst_27 = arith.constant dense<0.000000e+00> : vector<128xf32>
    %68 = vector.multi_reduction <add>, %67, %cst_27 [1] : vector<128x128xf32> to vector<128xf32>
    %69 = vector.shape_cast %68 : vector<128xf32> to vector<128x1xf32>
    %70 = tpu.reciprocal %69 {approx = true} : vector<128x1xf32> -> vector<128x1xf32>
    %71 = vector.broadcast %70 : vector<128x1xf32> to vector<128x128xf32>
    %72 = arith.mulf %67, %71 : vector<128x128xf32>
    %73 = vector.shape_cast %72 : vector<128x128xf32> to vector<8x16x128xf32>
    %c0_28 = arith.constant 0 : index
    %c0_29 = arith.constant 0 : index
    %c0_30 = arith.constant 0 : index
    %74 = vector.load %arg9[%c0_28, %c0_29, %c0_30] : memref<8x16x128xf32, #tpu.memory_space<vmem>>, vector<8x16x128xf32>
    tpu.vector_store %arg9[%c0_28, %c0_29, %c0_30], %73 {strides = array<i32>} : memref<8x16x128xf32, #tpu.memory_space<vmem>>, vector<8x16x128xf32>,
    %75 = vector.extract_strided_slice %73 {offsets = [0, 0, 0], sizes = [8, 16, 1], strides = [1, 1, 1]} : vector<8x16x128xf32> to vector<8x16x1xf32>
    %cst_31 = arith.constant dense<0xFF800000> : vector<8x1xf32>
    %76 = vector.multi_reduction <maximumf>, %75, %cst_31 [1] : vector<8x16x1xf32> to vector<8x1xf32>
    %77 = vector.shape_cast %76 : vector<8x1xf32> to vector<8x1x1xf32>
    %78 = vector.broadcast %77 : vector<8x1x1xf32> to vector<8x16x1xf32>
    %79 = arith.subf %75, %78 : vector<8x16x1xf32>
    %80 = math.exp %79 : vector<8x16x1xf32>
    %cst_32 = arith.constant dense<0.000000e+00> : vector<8x1xf32>
    %81 = vector.multi_reduction <add>, %80, %cst_32 [1] : vector<8x16x1xf32> to vector<8x1xf32>
    %82 = vector.shape_cast %81 : vector<8x1xf32> to vector<8x1x1xf32>
    %83 = tpu.reciprocal %82 {approx = true} : vector<8x1x1xf32> -> vector<8x1x1xf32>
    %84 = vector.broadcast %83 : vector<8x1x1xf32> to vector<8x16x1xf32>
    %85 = arith.mulf %80, %84 : vector<8x16x1xf32>
    %86 = vector.shape_cast %36 : vector<128x128xf32> to vector<8x16x128xf32>
    %87 = vector.broadcast %85 : vector<8x16x1xf32> to vector<8x16x128xf32>
    %88 = arith.mulf %87, %86 : vector<8x16x128xf32>
    %c0_33 = arith.constant 0 : index
    %c0_34 = arith.constant 0 : index
    %c0_35 = arith.constant 0 : index
    %89 = vector.load %arg10[%c0_33, %c0_34, %c0_35] : memref<8x16x128xf32, #tpu.memory_space<vmem>>, vector<8x16x128xf32>
    tpu.vector_store %arg10[%c0_33, %c0_34, %c0_35], %88 {strides = array<i32>} : memref<8x16x128xf32, #tpu.memory_space<vmem>>, vector<8x16x128xf32>,
    return
  }
  func.func @transform_0(%arg0: i32) -> (i32, i32, i32) {
    %c0_i32 = arith.constant 0 : i32
    %c0_i32_0 = arith.constant 0 : i32
    %c0_i32_1 = arith.constant 0 : i32
    return %arg0, %c0_i32, %c0_i32_0 : i32, i32, i32
  }
  func.func @transform_1(%arg0: i32) -> (i32, i32, i32) {
    %c0_i32 = arith.constant 0 : i32
    %c0_i32_0 = arith.constant 0 : i32
    %c0_i32_1 = arith.constant 0 : i32
    return %arg0, %c0_i32, %c0_i32_0 : i32, i32, i32
  }
  func.func @transform_2(%arg0: i32) -> (i32, i32, i32) {
    %c0_i32 = arith.constant 0 : i32
    %c0_i32_0 = arith.constant 0 : i32
    %c0_i32_1 = arith.constant 0 : i32
    return %arg0, %c0_i32, %c0_i32_0 : i32, i32, i32
  }
  func.func @transform_3(%arg0: i32) -> (i32, i32) {
    %c0_i32 = arith.constant 0 : i32
    %c0_i32_0 = arith.constant 0 : i32
    %c0_i32_1 = arith.constant 0 : i32
    return %c0_i32, %c0_i32_0 : i32, i32
  }
  func.func @transform_4(%arg0: i32) -> (i32, i32) {
    %c0_i32 = arith.constant 0 : i32
    %c0_i32_0 = arith.constant 0 : i32
    %c0_i32_1 = arith.constant 0 : i32
    return %c0_i32, %c0_i32_0 : i32, i32
  }
  func.func @transform_5(%arg0: i32) -> (i32, i32) {
    %c0_i32 = arith.constant 0 : i32
    %c0_i32_0 = arith.constant 0 : i32
    %c0_i32_1 = arith.constant 0 : i32
    return %c0_i32, %c0_i32_0 : i32, i32
  }
  func.func @transform_6(%arg0: i32) -> (i32, i32) {
    %c0_i32 = arith.constant 0 : i32
    %c0_i32_0 = arith.constant 0 : i32
    %c0_i32_1 = arith.constant 0 : i32
    return %c0_i32, %c0_i32_0 : i32, i32
  }
  func.func @transform_7(%arg0: i32) -> (i32, i32) {
    %c0_i32 = arith.constant 0 : i32
    %c0_i32_0 = arith.constant 0 : i32
    %c0_i32_1 = arith.constant 0 : i32
    return %c0_i32, %c0_i32_0 : i32, i32
  }
  func.func @transform_8(%arg0: i32) -> (i32, i32, i32) {
    %c0_i32 = arith.constant 0 : i32
    %c0_i32_0 = arith.constant 0 : i32
    %c0_i32_1 = arith.constant 0 : i32
    return %arg0, %c0_i32, %c0_i32_0 : i32, i32, i32
  }
  func.func @transform_9(%arg0: i32) -> (i32, i32, i32) {
    %c0_i32 = arith.constant 0 : i32
    %c0_i32_0 = arith.constant 0 : i32
    %c0_i32_1 = arith.constant 0 : i32
    return %arg0, %c0_i32, %c0_i32_0 : i32, i32, i32
  }
}

</mosaic_0001>

<bundles_post_ra>
// kernel: tpu_custom_call.1
= control target key start
LH: loop header
LB: loop body
LE: loop exit
PB: predicated region body
PF: predicated region fallthrough
CT: control target
= control target key end

     0   :  { %15 = vsyncpa [#allocation3], 0  ;;  %s3428_s0 = inlined_call_operand.vmem [shape: f32[8,16,128], index: 0, kind: input, shape index: {}]   ;;  %s3429_s1 = inlined_call_operand.vmem [shape: f32[8,1,128], index: 1, kind: input, shape index: {}]   ;;  %s3430_s2 = inlined_call_operand.vmem [shape: f32[8,16,1], index: 2, kind: input, shape index: {}]   ;;  %s3431_s3 = inlined_call_operand.vmem [shape: f32[1,128], index: 3, kind: input, shape index: {}]   ;;  %s3432_s4 = inlined_call_operand.vmem [shape: f32[1,128], index: 4, kind: input, shape index: {}]   ;;  %s3433_s5 = inlined_call_operand.hbm [shape: bf16[128,256], index: 5, kind: input, shape index: {}]   ;;  %s3434_s6 = inlined_call_operand.hbm [shape: bf16[128,128], index: 6, kind: input, shape index: {}]   ;;  %s3435_s7 = inlined_call_operand.hbm [shape: bf16[256,128], index: 7, kind: input, shape index: {}]   ;;  %s3436_s8 = inlined_call_operand.hbm [shape: f32[8,16,128], index: 8, kind: output, shape index: {0}]   ;;  %s3437_s9 = inlined_call_operand.hbm [shape: f32[8,16,128], index: 9, kind: output, shape index: {1}]  }
   0x1   :  { %16 = vsyncpa [#allocation6], 0 }
   0x2   :  { %17 = vsyncpa [#allocation4], 0  ;;  %s46_s11 = sshll.u32 %s3434_s6, 4  ;;  %s47_s11 = int_to_ptr.hbm [resolvable:$true] %s46_s11 }
   0x3   :  { %18 = vsyncpa [#allocation10], 0  ;;  %s2467_s12 = smov [#allocation5]   ;;  %s33_s16 = sshll.u32 %s3433_s5, 4  ;;  %s34_s16 = int_to_ptr.hbm [resolvable:$true] %s33_s16 }
   0x4   :  { %s48_s13 = sshll.u32 %s2467_s12, 4  ;;  %s2468_s17 = smov 64   ;;  %s49_s13 = int_to_ptr.vmem [resolvable:$true] %s48_s13 }
   0x5   :  { %s2469_s18 = smov 4   ;;  %s2470_s19 = smov [#allocation2]  }
   0x6   :  { %54 = dma.hbm_to_vmem [thread:$0]  %s47_s11, 1024, %s49_s13, [#allocation6], %s2468_s17, %s2468_s17, %s2469_s18  }
   0x7   :  { %s35_s20 = sshll.u32 %s2470_s19, 4  ;;  %s2471_s21 = smov 128   ;;  %s36_s20 = int_to_ptr.vmem [resolvable:$true] %s35_s20 }
   0x8   :  { %s2472_s22 = smov 8   ;;  %s59_s24 = sshll.u32 %s3435_s7, 4  ;;  %s60_s24 = int_to_ptr.hbm [resolvable:$true] %s59_s24 }
   0x9   :  { %41 = dma.hbm_to_vmem [thread:$0]  %s34_s16, 2048, %s36_s20, [#allocation3], %s2471_s21, %s2471_s21, %s2472_s22  }
   0xa   :  { %s2473_s25 = smov [#allocation7]  }
   0xb   :  { %s61_s5 = sshll.u32 %s2473_s25, 4  ;;  %s62_s5 = int_to_ptr.vmem [resolvable:$true] %s61_s5 }
   0xc   :  { %67 = dma.hbm_to_vmem [thread:$0]  %s60_s24, 2048, %s62_s5, [#allocation6], %s2468_s17, %s2468_s17, %s2469_s18  }
   0xd   :  { %2459 = dma.done.wait [#allocation3], 2048  }
   0xe   :  { %2460 = vsyncadd [#allocation3], 4294965248 }
   0xf   :  { %2461 = dma.done.wait [#allocation6], 3072  }
  0x10   :  { %2462 = vsyncadd [#allocation6], 4294964224  ;;  %v2543_v0 = vld [vmem:[%s3428_s0 + $0x10] sm:$0xff]  ;;  %v2548_v1 = vld [vmem:[%s3428_s0] sm:$0xff]  ;;  %v2474_v4 = vmov 0   ;;  %v2475_v27 = vmov 128.0  }
  0x11   :  { %116 = vadd.xlane.f32.xlu2 %v2543_v0  ;;  %112 = vadd.xlane.f32.xlu0 %v2548_v1  ;;  %v167_v2 = vmul.f32 %v2548_v1, %v2548_v1  ;;  %v2557_v3 = vld [vmem:[%s3428_s0 + $0x8] sm:$0xff]  ;;  %v2562_v5 = vld [vmem:[%s3428_s0 + $0x18] sm:$0xff]  ;;  %v169_v7 = vmul.f32 %v2543_v0, %v2543_v0  ;;  %v2573_v8 = vld [vmem:[%s3428_s0 + $0x20] sm:$0xff]  ;;  %2193 = vrcp.f32 %v2475_v27  ;;  %s1937_s30 = sshll.u32 %s3436_s8, 4  ;;  %s2476_s10 = smov [#allocation8]   ;;  %s1938_s30 = int_to_ptr.hbm [resolvable:$true] %s1937_s30 }
  0x12   :  { %2180 = vset.pattern.permute.xlu2 %v2474_v4  ;;  %2181 = vset.pattern.permute.xlu1 %v2474_v4  ;;  %v168_v6 = vmul.f32 %v2557_v3, %v2557_v3  ;;  %v170_v9 = vmul.f32 %v2562_v5, %v2562_v5  ;;  %v2581_v10 = vld [vmem:[%s3428_s0 + $0x30] sm:$0xff]  ;;  %v2586_v11 = vld [vmem:[%s3428_s0 + $0x28] sm:$0xff]  ;;  %v2594_v13 = vld [vmem:[%s3428_s0 + $0x40] sm:$0xff]  ;;  %v171_v14 = vmul.f32 %v2573_v8, %v2573_v8  ;;  %s1935_s11 = sshll.u32 %s2476_s10, 4  ;;  %s2477_s8 = smov [#allocation9]   ;;  %s1936_s11 = int_to_ptr.vmem [resolvable:$true] %s1935_s11 }
  0x13   :  { %183 = vadd.xlane.f32.xlu1 %v167_v2  ;;  %2182 = vset.pattern.permute.xlu0 %v2474_v4  ;;  %v173_v12 = vmul.f32 %v2581_v10, %v2581_v10  ;;  %v175_v15 = vmul.f32 %v2594_v13, %v2594_v13  ;;  %v172_v16 = vmul.f32 %v2586_v11, %v2586_v11  ;;  %v97_v17 = vld [vmem:[%s3430_s2 + $0x8] sm:$0xff]  ;;  %v96_v18 = vld [vmem:[%s3430_s2] sm:$0xff]  ;;  %v2613_v19 = vld [vmem:[%s3428_s0 + $0x50] sm:$0xff]  ;;  %s1948_s12 = sshll.u32 %s2477_s8, 4  ;;  %s1950_s15 = sshll.u32 %s3437_s9, 4  ;;  %s1949_s12 = int_to_ptr.vmem [resolvable:$true] %s1948_s12  ;;  %s1951_s15 = int_to_ptr.hbm [resolvable:$true] %s1950_s15 }
  0x14   :  { %v98_v20 = vld [vmem:[%s3430_s2 + $0x10] sm:$0xff]  ;;  %v2622_v21 = vld [vmem:[%s3428_s0 + $0x58] sm:$0xff]  ;;  %v100_v22 = vld [vmem:[%s3430_s2 + $0x20] sm:$0xff]  ;;  %v177_v36 = vmul.f32 %v2613_v19, %v2613_v19 }
  0x15   :  { %v2631_v23 = vld [vmem:[%s3428_s0 + $0x38] sm:$0xff]  ;;  %v104_v26 = vld [vmem:[%s3430_s2 + $0x40] sm:$0xff]  ;;  %v2648_v30 = vld [vmem:[%s3428_s0 + $0x48] sm:$0xff] }
  0x16   :  { %v103_v24 = vld [vmem:[%s3430_s2 + $0x38] sm:$0xff]  ;;  %v174_v25 = vmul.f32 %v2631_v23, %v2631_v23  ;;  %v102_v31 = vld [vmem:[%s3430_s2 + $0x30] sm:$0xff]  ;;  %v176_v33 = vmul.f32 %v2648_v30, %v2648_v30  ;;  %v2019_v48 = vld [vmem:[#allocation2 + $0x60] sm:$0xf] }
  0x17   :  { %v99_v28 = vld [vmem:[%s3430_s2 + $0x18] sm:$0xff]  ;;  %v2194_v29 = vpop.eup %2193  ;;  %v2027_v39 = vld [vmem:[#allocation2 + $0x70] sm:$0xf]  ;;  %v2143_v41 = vld [vmem:[#allocation2 + $0x74] sm:$0xf] }
  0x18   :  { %v145_v32 = vmul.f32 128.0, %v2194_v29  ;;  %vm149_vm0 = vweird.f32 %v2194_v29  ;;  %v2144_v40 = vld [vmem:[#allocation2 + $0x74] sm:$0xf0]  ;;  %v2029_v43 = vld [vmem:[#allocation2 + $0x78] sm:$0xf0]  ;;  %v2666_v51 = vld [vmem:[%s3428_s0 + $0x60] sm:$0xff] }
  0x19   :  { %118 = vadd.xlane.f32.xlu2 %v2562_v5  ;;  %114 = vadd.xlane.f32.xlu0 %v2557_v3  ;;  %v2028_v42 = vor.u32 %v2144_v40, %v2027_v39  ;;  %v2032_v45 = vor.u32 %v2143_v41, %v2029_v43  ;;  %v2142_v49 = vld [vmem:[#allocation2 + $0x64] sm:$0xf0]  ;;  %v2141_v50 = vld [vmem:[#allocation2 + $0x64] sm:$0xf]  ;;  %v2021_v52 = vld [vmem:[#allocation2 + $0x68] sm:$0xf0] }
  0x1a   :  { %v146_v34 = vsub.f32 1.0, %v145_v32  ;;  %v2020_v53 = vor.u32 %v2142_v49, %v2019_v48  ;;  %v2024_v54 = vor.u32 %v2141_v50, %v2021_v52  ;;  %v2011_v57 = vld [vmem:[#allocation2 + $0x50] sm:$0xf]  ;;  %v2140_v58 = vld [vmem:[#allocation2 + $0x54] sm:$0xf0]  ;;  %v178_v48 = vmul.f32 %v2622_v21, %v2622_v21 }
  0x1b   :  { %185 = vadd.xlane.f32.xlu1 %v168_v6  ;;  %711 = vmatpush.bf16.msra.mxu0 %v2028_v42  ;;  %v2012_v59 = vor.u32 %v2140_v58, %v2011_v57  ;;  %v2139_v60 = vld [vmem:[#allocation2 + $0x54] sm:$0xf]  ;;  %v2013_v61 = vld [vmem:[#allocation2 + $0x58] sm:$0xf0]  ;;  %v2136_v27 = vld [vmem:[#allocation2 + $0x34] sm:$0xf0] }
  0x1c   :  { %v147_v35 = vmul.f32 %v2194_v29, %v146_v34  ;;  %760 = vmatpush.bf16.msra.mxu1 %v2032_v45  ;;  %v2016_v63 = vor.u32 %v2139_v60, %v2013_v61  ;;  %v1989_v39 = vld [vmem:[#allocation2 + $0x28] sm:$0xf0]  ;;  %v1979_v42 = vld [vmem:[#allocation2 + $0x10] sm:$0xf]  ;;  %v2132_v43 = vld [vmem:[#allocation2 + $0x14] sm:$0xf0] }
  0x1d   :  { %v1980_v49 = vor.u32 %v2132_v43, %v1979_v42  ;;  %v1981_v50 = vld [vmem:[#allocation2 + $0x18] sm:$0xf0]  ;;  %v1971_v57 = vld [vmem:[#allocation2] sm:$0xf]  ;;  %v2130_v58 = vld [vmem:[#allocation2 + $0x4] sm:$0xf0] }
  0x1e   :  { %v148_v37 = vadd.f32 %v2194_v29, %v147_v35  ;;  %v1987_v35 = vld [vmem:[#allocation2 + $0x20] sm:$0xf]  ;;  %v1973_v60 = vld [vmem:[#allocation2 + $0x8] sm:$0xf0] }
  0x1f   :  { %712 = vmatpush.bf16.msra.mxu0 %v2020_v53 }
  0x20   :  { %v2658_v38 = vsel %vm149_vm0, %v2194_v29, %v148_v37  ;;  %761 = vmatpush.bf16.msra.mxu1 %v2024_v54  ;;  %v2135_v29 = vld [vmem:[#allocation2 + $0x34] sm:$0xf]  ;;  %v2133_v37 = vld [vmem:[#allocation2 + $0x24] sm:$0xf] }
  0x21   :  { %120 = vadd.xlane.f32.xlu2 %v2573_v8  ;;  %187 = vadd.xlane.f32.xlu0 %v169_v7  ;;  %v2003_v7 = vld [vmem:[#allocation2 + $0x40] sm:$0xf]  ;;  %v1992_v41 = vor.u32 %v2133_v37, %v1989_v39 }
  0x23   :  { %189 = vadd.xlane.f32.xlu1 %v170_v9  ;;  %713 = vmatpush.bf16.msra.mxu0 %v2012_v59  ;;  %v2138_v9 = vld [vmem:[#allocation2 + $0x44] sm:$0xf0]  ;;  %v2129_v59 = vld [vmem:[#allocation2 + $0x4] sm:$0xf] }
  0x24   :  { %762 = vmatpush.bf16.msra.mxu1 %v2016_v63  ;;  %v1976_v63 = vor.u32 %v2129_v59, %v1973_v60  ;;  %v110_v59 = vld [vmem:[%s3430_s2 + $0x70] sm:$0xff] }
  0x29   :  { %122 = vadd.xlane.f32.xlu0 %v2586_v11 }
  0x2b   :  { %195 = vadd.xlane.f32.xlu1 %v173_v12  ;;  %v2137_v12 = vld [vmem:[#allocation2 + $0x44] sm:$0xf] }
  0x31   :  { %191 = vadd.xlane.f32.xlu0 %v171_v14 }
  0x33   :  { %199 = vadd.xlane.f32.xlu1 %v175_v15  ;;  %v2680_v15 = vld [vmem:[%s3428_s0 + $0x68] sm:$0xff] }
  0x39   :  { %518 = vperm.xlu2 %2180, %v97_v17   ;;  %193 = vadd.xlane.f32.xlu0 %v172_v16  ;;  %v2005_v16 = vld [vmem:[#allocation2 + $0x48] sm:$0xf0] }
  0x41   :  { %124 = vadd.xlane.f32.xlu0 %v2581_v10 }
  0x49   :  { %128 = vadd.xlane.f32.xlu0 %v2594_v13 }
  0x4c   :  { %513 = vperm.xlu1 %2181, %v96_v18   ;;  %v2004_v18 = vor.u32 %v2138_v9, %v2003_v7  ;;  %v180_v7 = vmul.f32 %v2680_v15, %v2680_v15 }
  0x4e   :  { %714 = vmatpush.bf16.msra.mxu0 %v2004_v18 }
  0x51   :  { %132 = vadd.xlane.f32.xlu0 %v2613_v19 }
  0x54   :  { %523 = vperm.xlu1 %2181, %v98_v20   ;;  %v2008_v20 = vor.u32 %v2137_v12, %v2005_v16 }
  0x56   :  { %763 = vmatpush.bf16.msra.mxu1 %v2008_v20  ;;  %v101_v20 = vld [vmem:[%s3430_s2 + $0x28] sm:$0xff] }
  0x59   :  { %134 = vadd.xlane.f32.xlu0 %v2622_v21 }
  0x5c   :  { %533 = vperm.xlu1 %2181, %v100_v22  }
  0x62   :  { %126 = vadd.xlane.f32.xlu2 %v2631_v23 }
  0x64   :  { %548 = vperm.xlu1 %2181, %v103_v24  }
  0x6a   :  { %197 = vadd.xlane.f32.xlu2 %v174_v25  ;;  %v179_v25 = vmul.f32 %v2666_v51, %v2666_v51 }
  0x6c   :  { %553 = vperm.xlu1 %2181, %v104_v26   ;;  %v1995_v26 = vld [vmem:[#allocation2 + $0x30] sm:$0xf] }
  0x6d   :  { %528 = vperm.xlu0 %2182, %v99_v28   ;;  %v1996_v28 = vor.u32 %v2136_v27, %v1995_v26 }
  0x6f   :  { %715 = vmatpush.bf16.msra.mxu0 %v1996_v28 }
  0x72   :  { %130 = vadd.xlane.f32.xlu2 %v2648_v30 }
  0x75   :  { %543 = vperm.xlu0 %2182, %v102_v31   ;;  %v1997_v31 = vld [vmem:[#allocation2 + $0x38] sm:$0xf0] }
  0x76   :  { %v2000_v34 = vor.u32 %v2135_v29, %v1997_v31 }
  0x78   :  { %764 = vmatpush.bf16.msra.mxu1 %v2000_v34 }
  0x7a   :  { %201 = vadd.xlane.f32.xlu2 %v176_v33 }
  0x7c   :  { %765 = vmatpush.bf16.msra.mxu1 %v1992_v41  ;;  %v105_v41 = vld [vmem:[%s3430_s2 + $0x48] sm:$0xff] }
  0x82   :  { %203 = vadd.xlane.f32.xlu2 %v177_v36  ;;  %v2134_v36 = vld [vmem:[#allocation2 + $0x24] sm:$0xf0] }
  0x83   :  { %v1988_v40 = vor.u32 %v2134_v36, %v1987_v35  ;;  %v107_v36 = vld [vmem:[%s3430_s2 + $0x58] sm:$0xff] }
  0x84   :  { %v113_v44 = vpop.xlane.xlu0 %112 }
  0x85   :  { %v2661_v46 = vmul.f32 %v2658_v38, %v113_v44  ;;  %716 = vmatpush.bf16.msra.mxu0 %v1988_v40  ;;  %v2131_v44 = vld [vmem:[#allocation2 + $0x14] sm:$0xf] }
  0x86   :  { %v184_v47 = vpop.xlane.xlu1 %183  ;;  %v1984_v54 = vor.u32 %v2131_v44, %v1981_v50 }
  0x87   :  { %v231_v55 = vmul.f32 %v2661_v46, %v2661_v46  ;;  %v215_v56 = vmul.f32 %v184_v47, %v2658_v38  ;;  %v117_v47 = vpop.xlane.xlu2 %116 }
  0x88   :  { %766 = vmatpush.bf16.msra.mxu1 %v1984_v54  ;;  %v2710_v18 = vmul.f32 %v2658_v38, %v117_v47 }
  0x89   :  { %v247_v2 = vsub.f32 %v215_v56, %v231_v55  ;;  %717 = vmatpush.bf16.msra.mxu0 %v1980_v49 }
  0x8a   :  { %136 = vadd.xlane.f32.xlu2 %v2666_v51  ;;  %v233_v31 = vmul.f32 %v2710_v18, %v2710_v18 }
  0x8b   :  { %v2683_v22 = vadd.f32 1e-05, %v247_v2 }
  0x8c   :  { %v115_v62 = vpop.xlane.xlu0 %114  ;;  %767 = vmatpush.bf16.msra.mxu1 %v1976_v63 }
  0x8d   :  { %v2673_v4 = vmul.f32 %v2658_v38, %v115_v62  ;;  %2195 = vrsqrt.f32 %v2683_v22  ;;  %v1972_v62 = vor.u32 %v2130_v58, %v1971_v57  ;;  %vm301_vm5 = vweird.f32 %v2683_v22 }
  0x8e   :  { %v186_v6 = vpop.xlane.xlu1 %185 }
  0x8f   :  { %v232_v14 = vmul.f32 %v2673_v4, %v2673_v4  ;;  %v216_v17 = vmul.f32 %v186_v6, %v2658_v38  ;;  %718 = vmatpush.bf16.msra.mxu0 %v1972_v62  ;;  %v264_v43 = vsub.f32 %v2557_v3, %v2673_v4  ;;  %v2756_v3 = vld [vmem:[%s3431_s3] ss:$0 sm:$0xff] }
  0x91   :  { %v248_v24 = vsub.f32 %v216_v17, %v232_v14  ;;  %v119_v14 = vpop.xlane.xlu2 %118 }
  0x92   :  { %138 = vadd.xlane.f32.xlu2 %v2680_v15  ;;  %v2707_v17 = vmul.f32 %v2658_v38, %v119_v14 }
  0x93   :  { %v2688_v32 = vadd.f32 1e-05, %v248_v24  ;;  %v2692_v45 = vpop.eup %2195 }
  0x94   :  { %v188_v33 = vpop.xlane.xlu0 %187  ;;  %v296_v56 = vmul.f32 %v2692_v45, %v2683_v22  ;;  %v234_v27 = vmul.f32 %v2707_v17, %v2707_v17  ;;  %vm302_vm2 = vweird.f32 %v2692_v45  ;;  %v108_v22 = vld [vmem:[%s3430_s2 + $0x60] sm:$0xff] }
  0x95   :  { %2197 = vrsqrt.f32 %v2688_v32  ;;  %vm311_vm3 = vweird.f32 %v2688_v32  ;;  %vm303_vm6 = vmor %vm301_vm5, %vm302_vm2 }
  0x96   :  { %207 = vadd.xlane.f32.xlu1 %v179_v25  ;;  %v297_v2 = vmul.f32 %v2692_v45, %v296_v56  ;;  %v190_v6 = vpop.xlane.xlu1 %189  ;;  %v217_v25 = vmul.f32 %v188_v33, %v2658_v38  ;;  %v2728_v33 = vld [vmem:[%s3428_s0 + $0x78] sm:$0xff] }
  0x97   :  { %v218_v28 = vmul.f32 %v190_v6, %v2658_v38 }
  0x98   :  { %v298_v16 = vmul.f32 0.5, %v297_v2  ;;  %v249_v37 = vsub.f32 %v217_v25, %v233_v31  ;;  %v111_v31 = vld [vmem:[%s3430_s2 + $0x78] sm:$0xff] }
  0x99   :  { %v250_v40 = vsub.f32 %v218_v28, %v234_v27  ;;  %v2746_v49 = vpop.xlane.xlu2 %120 }
  0x9a   :  { %v299_v26 = vsub.f32 1.5, %v298_v16  ;;  %v281_v44 = vadd.f32 1e-05, %v249_v37 }
  0x9b   :  { %v2198_v52 = vpop.eup %2197  ;;  %v282_v47 = vadd.f32 1e-05, %v250_v40 }
  0x9c   :  { %v2696_v53 = vpop.xlane.xlu0 %122  ;;  %v306_v55 = vmul.f32 %v2198_v52, %v2688_v32  ;;  %vm312_vm1 = vweird.f32 %v2198_v52  ;;  %v300_v39 = vmul.f32 %v2692_v45, %v299_v26  ;;  %2199 = vrsqrt.f32 %v281_v44 }
  0x9d   :  { %vm313_vm4 = vmor %vm311_vm3, %vm312_vm1  ;;  %2201 = vrsqrt.f32 %v282_v47  ;;  %vm321_vm9 = vweird.f32 %v281_v44  ;;  %vm331_vm11 = vweird.f32 %v282_v47 }
  0x9e   :  { %v307_v61 = vmul.f32 %v2198_v52, %v306_v55  ;;  %v2719_v29 = vpop.xlane.xlu1 %195  ;;  %v304_v32 = vsel %vm303_vm6, %v2692_v45, %v300_v39  ;;  %v2763_v45 = vld [vmem:[%s3432_s4] ss:$0 sm:$0xff] }
  0x9f   :  { %205 = vadd.xlane.f32.xlu0 %v178_v48  ;;  %v263_v48 = vsub.f32 %v2548_v1, %v2661_v46 }
  0xa0   :  { %v308_v9 = vmul.f32 0.5, %v307_v61 }
  0xa1   :  { %v455_v4 = vmul.f32 %v304_v32, %v263_v48  ;;  %v2772_v2 = vpop.permute.xlu2 %518 }
  0xa2   :  { %v309_v24 = vsub.f32 1.5, %v308_v9 }
  0xa3   :  { %v475_v46 = vmul.f32 %v2756_v3, %v455_v4 }
  0xa4   :  { %v2704_v12 = vpop.xlane.xlu0 %191  ;;  %v310_v34 = vmul.f32 %v2198_v52, %v309_v24 }
  0xa5   :  { %v495_v62 = vadd.f32 %v2763_v45, %v475_v46 }
  0xa6   :  { %v314_v42 = vsel %vm313_vm4, %v2198_v52, %v310_v34  ;;  %v200_v55 = vpop.xlane.xlu1 %199  ;;  %v2200_v52 = vpop.eup %2199 }
  0xa7   :  { %209 = vadd.xlane.f32.xlu0 %v180_v7  ;;  %v456_v50 = vmul.f32 %v314_v42, %v264_v43  ;;  %v2202_v57 = vpop.eup %2201  ;;  %v223_v60 = vmul.f32 %v200_v55, %v2658_v38  ;;  %v316_v63 = vmul.f32 %v2200_v52, %v281_v44  ;;  %vm322_vm7 = vweird.f32 %v2200_v52 }
  0xa8   :  { %v326_v7 = vmul.f32 %v2202_v57, %v282_v47  ;;  %vm332_vm8 = vweird.f32 %v2202_v57  ;;  %vm2786_vm10 = vmor %vm321_vm9, %vm322_vm7  ;;  %v265_v44 = vsub.f32 %v2543_v0, %v2710_v18  ;;  %v2804_v47 = vmul.f32 %v2658_v38, %v2746_v49 }
  0xa9   :  { %v476_v1 = vmul.f32 %v2756_v3, %v456_v50  ;;  %v317_v26 = vmul.f32 %v2200_v52, %v316_v63  ;;  %vm2790_vm12 = vmor %vm331_vm11, %vm332_vm8 }
  0xaa   :  { %538 = vperm.xlu2 %2180, %v101_v20   ;;  %v106_v20 = vld [vmem:[%s3430_s2 + $0x50] sm:$0xff]  ;;  %v327_v27 = vmul.f32 %v2202_v57, %v326_v7 }
  0xab   :  { %v496_v56 = vadd.f32 %v2763_v45, %v476_v1  ;;  %v318_v34 = vmul.f32 0.5, %v317_v26  ;;  %v182_v26 = vmul.f32 %v2728_v33, %v2728_v33 }
  0xac   :  { %v2723_v35 = vpop.xlane.xlu0 %193 }
  0xad   :  { %v592_v16 = vmul.f32 %v2772_v2, %v496_v56  ;;  %v319_v39 = vsub.f32 1.5, %v318_v34  ;;  %v266_v56 = vsub.f32 %v2562_v5, %v2707_v17  ;;  %v219_v5 = vmul.f32 %v2704_v12, %v2658_v38 }
  0xae   :  { %v220_v49 = vmul.f32 %v2723_v35, %v2658_v38 }
  0xaf   :  { %142 = vadd.xlane.f32.xlu0 %v2728_v33  ;;  %568 = vperm.xlu1 %2181, %v107_v36   ;;  %v328_v36 = vmul.f32 0.5, %v327_v27  ;;  %v320_v32 = vmul.f32 %v2200_v52, %v319_v39 }
  0xb1   :  { %v329_v40 = vsub.f32 1.5, %v328_v36  ;;  %v324_v1 = vsel %vm2786_vm10, %v2200_v52, %v320_v32  ;;  %v2809_v52 = vmul.f32 %v2658_v38, %v2696_v53  ;;  %v235_v53 = vmul.f32 %v2804_v47, %v2804_v47 }
  0xb2   :  { %558 = vperm.xlu2 %2180, %v105_v41  }
  0xb3   :  { %v330_v48 = vmul.f32 %v2202_v57, %v329_v40  ;;  %v251_v7 = vsub.f32 %v219_v5, %v235_v53 }
  0xb4   :  { %v2748_v54 = vpop.xlane.xlu0 %124 }
  0xb5   :  { %v334_v46 = vsel %vm2790_vm12, %v2202_v57, %v330_v48 }
  0xb6   :  { %v458_v0 = vmul.f32 %v334_v46, %v266_v56 }
  0xb7   :  { %573 = vperm.xlu1 %2181, %v108_v22  }
  0xb8   :  { %v478_v63 = vmul.f32 %v2756_v3, %v458_v0 }
  0xbc   :  { %v129_v58 = vpop.xlane.xlu0 %128 }
  0xbd   :  { %v159_v61 = vmul.f32 %v2658_v38, %v129_v58 }
  0xbe   :  { %v2774_v6 = vpop.permute.xlu1 %513 }
  0xbf   :  { %v239_v9 = vmul.f32 %v159_v61, %v159_v61  ;;  %583 = vperm.xlu1 %2181, %v110_v59   ;;  %v591_v14 = vmul.f32 %v2774_v6, %v495_v62  ;;  %v271_v59 = vsub.f32 %v2594_v13, %v159_v61  ;;  %v457_v62 = vmul.f32 %v324_v1, %v265_v44  ;;  %v2822_v13 = vld [vmem:[%s3428_s0 + $0x70] sm:$0xff] }
  0xc0   :  { %v236_v61 = vmul.f32 %v2809_v52, %v2809_v52 }
  0xc1   :  { %v255_v24 = vsub.f32 %v223_v60, %v239_v9  ;;  %v607_v25 = vpack.c.bf16 %v592_v16, %v591_v14  ;;  %v477_v12 = vmul.f32 %v2756_v3, %v457_v62 }
  0xc2   :  { %v252_v9 = vsub.f32 %v220_v49, %v236_v61  ;;  %v109_v61 = vld [vmem:[%s3430_s2 + $0x68] sm:$0xff] }
  0xc3   :  { %v287_v28 = vadd.f32 1e-05, %v255_v24  ;;  %563 = vperm.xlu0 %2182, %v106_v20   ;;  %719 = vmatmul.bf16.vlgmr.msra.gmra.mxu0 %v607_v25  ;;  %v497_v16 = vadd.f32 %v2763_v45, %v477_v12  ;;  %v498_v20 = vadd.f32 %v2763_v45, %v478_v63  ;;  %v283_v24 = vadd.f32 1e-05, %v251_v7 }
  0xc4   :  { %768 = vmatmul.bf16.vlgmr.msra.gmra.mxu1 %v607_v25  ;;  %v2784_v42 = vpop.xlane.xlu0 %132  ;;  %v284_v27 = vadd.f32 1e-05, %v252_v9 }
  0xc5   :  { %2203 = vrsqrt.f32 %v287_v28  ;;  %vm381_vm14 = vweird.f32 %v287_v28  ;;  %vm341_vm2 = vweird.f32 %v283_v24 }
  0xc6   :  { %v2831_v35 = vpop.permute.xlu1 %523  ;;  %2205 = vrsqrt.f32 %v283_v24  ;;  %vm351_vm4 = vweird.f32 %v284_v27 }
  0xc7   :  { %588 = vperm.xlu1 %2181, %v111_v31   ;;  %v593_v31 = vmul.f32 %v2831_v35, %v497_v16  ;;  %2207 = vrsqrt.f32 %v284_v27 }
  0xcb   :  { %v2204_v37 = vpop.eup %2203 }
  0xcc   :  { %v376_v41 = vmul.f32 %v2204_v37, %v287_v28  ;;  %vm382_vm13 = vweird.f32 %v2204_v37  ;;  %v2815_v18 = vpop.xlane.xlu0 %134 }
  0xcd   :  { %vm383_vm15 = vmor %vm381_vm14, %vm382_vm13 }
  0xce   :  { %v377_v43 = vmul.f32 %v2204_v37, %v376_v41 }
  0xd0   :  { %v378_v50 = vmul.f32 0.5, %v377_v43  ;;  %v221_v43 = vmul.f32 %v2719_v29, %v2658_v38 }
  0xd2   :  { %v379_v4 = vsub.f32 1.5, %v378_v50  ;;  %v2206_v50 = vpop.eup %2205 }
  0xd3   :  { %v2208_v55 = vpop.eup %2207  ;;  %v336_v22 = vmul.f32 %v2206_v50, %v283_v24  ;;  %vm342_vm0 = vweird.f32 %v2206_v50  ;;  %v268_v24 = vsub.f32 %v2586_v11, %v2809_v52  ;;  %v2902_v52 = vpop.permute.xlu1 %533 }
  0xd4   :  { %v380_v58 = vmul.f32 %v2204_v37, %v379_v4  ;;  %v346_v46 = vmul.f32 %v2208_v55, %v284_v27  ;;  %vm352_vm1 = vweird.f32 %v2208_v55  ;;  %vm343_vm3 = vmor %vm341_vm2, %vm342_vm0 }
  0xd5   :  { %v127_v60 = vpop.xlane.xlu2 %126  ;;  %v337_v56 = vmul.f32 %v2206_v50, %v336_v22  ;;  %vm353_vm5 = vmor %vm351_vm4, %vm352_vm1 }
  0xd6   :  { %v384_v57 = vsel %vm383_vm15, %v2204_v37, %v380_v58  ;;  %v2840_v28 = vmul.f32 %v2658_v38, %v127_v60  ;;  %v2846_v37 = vmul.f32 %v2658_v38, %v2748_v54  ;;  %v181_v54 = vmul.f32 %v2822_v13, %v2822_v13 }
  0xd7   :  { %v2813_v17 = vmul.f32 %v384_v57, %v271_v59  ;;  %v347_v29 = vmul.f32 %v2208_v55, %v346_v46  ;;  %v338_v60 = vmul.f32 0.5, %v337_v56 }
  0xd8   :  { %v238_v39 = vmul.f32 %v2840_v28, %v2840_v28  ;;  %v237_v32 = vmul.f32 %v2846_v37, %v2846_v37 }
  0xd9   :  { %v348_v57 = vmul.f32 0.5, %v347_v29  ;;  %v339_v53 = vsub.f32 1.5, %v338_v60 }
  0xda   :  { %v253_v4 = vsub.f32 %v221_v43, %v237_v32 }
  0xdb   :  { %140 = vadd.xlane.f32.xlu2 %v2822_v13  ;;  %v349_v12 = vsub.f32 1.5, %v348_v57 }
  0xdc   :  { %v2857_v58 = vadd.f32 1e-05, %v253_v4 }
  0xdd   :  { %v198_v14 = vpop.xlane.xlu2 %197  ;;  %v350_v16 = vmul.f32 %v2208_v55, %v349_v12 }
  0xde   :  { %v222_v40 = vmul.f32 %v198_v14, %v2658_v38  ;;  %v340_v14 = vmul.f32 %v2206_v50, %v339_v53  ;;  %vm361_vm10 = vweird.f32 %v2857_v58 }
  0xdf   :  { %v2835_v25 = vpop.permute.xlu0 %528  ;;  %v354_v32 = vsel %vm353_vm5, %v2208_v55, %v350_v16 }
  0xe0   :  { %v594_v34 = vmul.f32 %v2835_v25, %v498_v20  ;;  %v254_v48 = vsub.f32 %v222_v40, %v238_v39  ;;  %v344_v43 = vsel %vm343_vm3, %v2206_v50, %v340_v14  ;;  %v460_v22 = vmul.f32 %v354_v32, %v268_v24  ;;  %v2159_v24 = vld [vmem:[#allocation7 + $0x70] sm:$0xff] }
  0xe2   :  { %v608_v36 = vpack.c.bf16 %v594_v34, %v593_v31  ;;  %v286_v1 = vadd.f32 1e-05, %v254_v48  ;;  %v2881_v34 = vmul.f32 %v2658_v38, %v2784_v42  ;;  %v267_v48 = vsub.f32 %v2573_v8, %v2804_v47 }
  0xe3   :  { %213 = vadd.xlane.f32.xlu2 %v182_v26  ;;  %v480_v11 = vmul.f32 %v2756_v3, %v460_v22 }
  0xe4   :  { %724 = vmatmul.bf16.gmra.mxu0 %v608_v36  ;;  %773 = vmatmul.bf16.gmra.mxu1 %v608_v36  ;;  %2209 = vrsqrt.f32 %v286_v1  ;;  %v241_v42 = vmul.f32 %v2881_v34, %v2881_v34  ;;  %vm371_vm7 = vweird.f32 %v286_v1 }
  0xe5   :  { %v131_v41 = vpop.xlane.xlu2 %130  ;;  %2211 = vrsqrt.f32 %v2857_v58 }
  0xe6   :  { %v2860_v59 = vmul.f32 %v2658_v38, %v131_v41 }
  0xe7   :  { %v2906_v29 = vpop.permute.xlu0 %543 }
  0xe8   :  { %v240_v5 = vmul.f32 %v2860_v59, %v2860_v59 }
  0xea   :  { %v2863_v0 = vpop.eup %2209 }
  0xeb   :  { %v366_v63 = vmul.f32 %v2863_v0, %v286_v1  ;;  %v2872_v7 = vpop.eup %2211  ;;  %vm372_vm6 = vweird.f32 %v2863_v0 }
  0xec   :  { %v356_v20 = vmul.f32 %v2872_v7, %v2857_v58  ;;  %vm2910_vm8 = vmor %vm371_vm7, %vm372_vm6  ;;  %vm362_vm9 = vweird.f32 %v2872_v7  ;;  %v2152_v58 = vld [vmem:[#allocation7 + $0x38] sm:$0xff] }
  0xed   :  { %v202_v44 = vpop.xlane.xlu2 %201  ;;  %211 = vadd.xlane.f32.xlu0 %v181_v54  ;;  %v367_v26 = vmul.f32 %v2863_v0, %v366_v63  ;;  %v459_v54 = vmul.f32 %v344_v43, %v267_v48  ;;  %vm363_vm11 = vmor %vm361_vm10, %vm362_vm9  ;;  %1145 = vmatpush.bf16.msra.mxu2 %v2152_v58  ;;  %v2151_v48 = vld [vmem:[#allocation7 + $0x30] sm:$0xff] }
  0xee   :  { %v224_v49 = vmul.f32 %v202_v44, %v2658_v38  ;;  %v357_v40 = vmul.f32 %v2872_v7, %v356_v20 }
  0xef   :  { %v368_v41 = vmul.f32 0.5, %v367_v26  ;;  %v479_v8 = vmul.f32 %v2756_v3, %v459_v54 }
  0xf0   :  { %v256_v9 = vsub.f32 %v224_v49, %v240_v5  ;;  %v358_v4 = vmul.f32 0.5, %v357_v40  ;;  %v500_v5 = vadd.f32 %v2763_v45, %v480_v11  ;;  %v2941_v40 = vpop.permute.xlu1 %548 }
  0xf1   :  { %v369_v46 = vsub.f32 1.5, %v368_v41  ;;  %1146 = vmatpush.bf16.msra.mxu2 %v2151_v48 }
  0xf2   :  { %v2883_v36 = vadd.f32 1e-05, %v256_v9  ;;  %v359_v47 = vsub.f32 1.5, %v358_v4  ;;  %v2931_v9 = vmul.f32 %v2658_v38, %v2815_v18 }
  0xf3   :  { %v370_v56 = vmul.f32 %v2863_v0, %v369_v46  ;;  %v2150_v46 = vld [vmem:[#allocation7 + $0x28] sm:$0xff] }
  0xf4   :  { %2213 = vrsqrt.f32 %v2883_v36  ;;  %v360_v49 = vmul.f32 %v2872_v7, %v359_v47  ;;  %v242_v18 = vmul.f32 %v2931_v9, %v2931_v9  ;;  %vm391_vm13 = vweird.f32 %v2883_v36 }
  0xf5   :  { %v204_v62 = vpop.xlane.xlu2 %203  ;;  %v374_v1 = vsel %vm2910_vm8, %v2863_v0, %v370_v56  ;;  %1147 = vmatpush.bf16.msra.mxu2 %v2150_v46 }
  0xf6   :  { %v225_v39 = vmul.f32 %v204_v62, %v2658_v38  ;;  %v499_v62 = vadd.f32 %v2763_v45, %v479_v8  ;;  %v364_v0 = vsel %vm363_vm11, %v2872_v7, %v360_v49  ;;  %v2158_v8 = vld [vmem:[#allocation7 + $0x68] sm:$0xff] }
  0xf8   :  { %v257_v27 = vsub.f32 %v225_v39, %v241_v42  ;;  %v595_v12 = vmul.f32 %v2902_v52, %v499_v62  ;;  %v2160_v39 = vld [vmem:[#allocation7 + $0x78] sm:$0xff]  ;;  %v2954_v57 = vpop.permute.xlu1 %553 }
  0xf9   :  { %1194 = vmatpush.bf16.msra.mxu3 %v2160_v39  ;;  %v2147_v39 = vld [vmem:[#allocation7 + $0x10] sm:$0xff] }
  0xfa   :  { %v2896_v50 = vpop.eup %2213  ;;  %v2898_v55 = vadd.f32 1e-05, %v257_v27 }
  0xfb   :  { %578 = vperm.xlu2 %2180, %v109_v61   ;;  %v386_v60 = vmul.f32 %v2896_v50, %v2883_v36  ;;  %v270_v61 = vsub.f32 %v2631_v23, %v2840_v28  ;;  %v269_v23 = vsub.f32 %v2581_v10, %v2846_v37  ;;  %vm392_vm12 = vweird.f32 %v2896_v50 }
  0xfc   :  { %2215 = vrsqrt.f32 %v2898_v55  ;;  %vm393_vm14 = vmor %vm391_vm13, %vm392_vm12  ;;  %vm401_vm1 = vweird.f32 %v2898_v55 }
  0xfd   :  { %v2877_v31 = vpop.xlane.xlu2 %136  ;;  %v387_v14 = vmul.f32 %v2896_v50, %v386_v60  ;;  %v462_v20 = vmul.f32 %v374_v1, %v270_v61  ;;  %v461_v32 = vmul.f32 %v364_v0, %v269_v23  ;;  %1195 = vmatpush.bf16.msra.mxu3 %v2159_v24  ;;  %v2149_v60 = vld [vmem:[#allocation7 + $0x20] sm:$0xff]  ;;  %v272_v61 = vsub.f32 %v2648_v30, %v2860_v59  ;;  %v2148_v23 = vld [vmem:[#allocation7 + $0x18] sm:$0xff]  ;;  %v2155_v24 = vld [vmem:[#allocation7 + $0x50] sm:$0xff] }
  0xfe   :  { %1148 = vmatpush.bf16.msra.mxu2 %v2149_v60  ;;  %v2157_v0 = vld [vmem:[#allocation7 + $0x60] sm:$0xff]  ;;  %v2156_v59 = vld [vmem:[#allocation7 + $0x58] sm:$0xff] }
  0xff   :  { %v388_v41 = vmul.f32 0.5, %v387_v14  ;;  %v482_v7 = vmul.f32 %v2756_v3, %v462_v20  ;;  %v481_v54 = vmul.f32 %v2756_v3, %v461_v32 }
 0x101   :  { %v389_v42 = vsub.f32 1.5, %v388_v41  ;;  %v502_v22 = vadd.f32 %v2763_v45, %v482_v7  ;;  %v501_v47 = vadd.f32 %v2763_v45, %v481_v54  ;;  %1196 = vmatpush.bf16.msra.mxu3 %v2158_v8 }
 0x102   :  { %v2935_v26 = vpop.eup %2215  ;;  %1149 = vmatpush.bf16.msra.mxu2 %v2148_v23 }
 0x103   :  { %v396_v10 = vmul.f32 %v2935_v26, %v2898_v55  ;;  %v390_v11 = vmul.f32 %v2896_v50, %v389_v42  ;;  %v598_v56 = vmul.f32 %v2941_v40, %v502_v22  ;;  %vm402_vm15 = vweird.f32 %v2935_v26  ;;  %v2146_v22 = vld [vmem:[#allocation7 + $0x8] sm:$0xff] }
 0x104   :  { %vm2975_vm2 = vmor %vm401_vm1, %vm402_vm15  ;;  %v273_v42 = vsub.f32 %v2613_v19, %v2881_v34  ;;  %v2154_v19 = vld [vmem:[#allocation7 + $0x48] sm:$0xff]  ;;  %v2145_v34 = vld [vmem:[#allocation7] sm:$0xff]  ;;  %vm1284_vm1 = vcmask 1041409  }
 0x105   :  { %v2894_v44 = vpop.xlane.xlu2 %138  ;;  %v397_v4 = vmul.f32 %v2935_v26, %v396_v10  ;;  %v394_v1 = vsel %vm393_vm14, %v2896_v50, %v390_v11  ;;  %1197 = vmatpush.bf16.msra.mxu3 %v2157_v0 }
 0x106   :  { %v464_v20 = vmul.f32 %v394_v1, %v272_v61  ;;  %1150 = vmatpush.bf16.msra.mxu2 %v2147_v39  ;;  %v2153_v61 = vld [vmem:[#allocation7 + $0x40] sm:$0xff] }
 0x107   :  { %v398_v62 = vmul.f32 0.5, %v397_v4 }
 0x108   :  { %v484_v41 = vmul.f32 %v2756_v3, %v464_v20 }
 0x109   :  { %v399_v14 = vsub.f32 1.5, %v398_v62  ;;  %v208_v30 = vpop.xlane.xlu1 %207  ;;  %1198 = vmatpush.bf16.msra.mxu3 %v2156_v59 }
 0x10a   :  { %v227_v10 = vmul.f32 %v208_v30, %v2658_v38  ;;  %1151 = vmatpush.bf16.msra.mxu2 %v2146_v22 }
 0x10b   :  { %v400_v50 = vmul.f32 %v2935_v26, %v399_v14 }
 0x10d   :  { %v2919_v53 = vpop.permute.xlu2 %538  ;;  %v404_v48 = vsel %vm2975_vm2, %v2935_v26, %v400_v50  ;;  %1199 = vmatpush.bf16.msra.mxu3 %v2155_v24  ;;  %vm1287_vm2 = vcmask 1042434  }
 0x10e   :  { %v596_v63 = vmul.f32 %v2919_v53, %v500_v5  ;;  %v597_v5 = vmul.f32 %v2906_v29, %v501_v47  ;;  %v465_v11 = vmul.f32 %v404_v48, %v273_v42  ;;  %1152 = vmatpush.bf16.msra.mxu2 %v2145_v34 }
 0x110   :  { %v609_v16 = vpack.c.bf16 %v596_v63, %v595_v12  ;;  %v610_v63 = vpack.c.bf16 %v598_v56, %v597_v5 }
 0x111   :  { %1200 = vmatpush.bf16.msra.mxu3 %v2154_v19 }
 0x112   :  { %v206_v28 = vpop.xlane.xlu0 %205  ;;  %729 = vmatmul.bf16.gmra.mxu0 %v609_v16  ;;  %778 = vmatmul.bf16.gmra.mxu1 %v609_v16 }
 0x113   :  { %v226_v43 = vmul.f32 %v206_v28, %v2658_v38  ;;  %v2963_v28 = vmul.f32 %v2658_v38, %v2877_v31  ;;  %v2973_v31 = vmul.f32 %v2658_v38, %v2894_v44 }
 0x115   :  { %v258_v37 = vsub.f32 %v226_v43, %v242_v18  ;;  %v483_v43 = vmul.f32 %v2756_v3, %v2813_v17  ;;  %v243_v7 = vmul.f32 %v2963_v28, %v2963_v28  ;;  %v274_v17 = vsub.f32 %v2622_v21, %v2931_v9  ;;  %v2984_v55 = vpop.permute.xlu2 %558  ;;  %1201 = vmatpush.bf16.msra.mxu3 %v2153_v61 }
 0x116   :  { %v244_v21 = vmul.f32 %v2973_v31, %v2973_v31 }
 0x117   :  { %v290_v27 = vadd.f32 1e-05, %v258_v37  ;;  %v259_v4 = vsub.f32 %v227_v10, %v243_v7  ;;  %v503_v46 = vadd.f32 %v2763_v45, %v483_v43  ;;  %v2185_v43 = vld [vmem:[%s3429_s1] ss:$0 sm:$0xff] }
 0x119   :  { %2217 = vrsqrt.f32 %v290_v27  ;;  %vm411_vm3 = vweird.f32 %v290_v27  ;;  %v599_v56 = vmul.f32 %v2954_v57, %v503_v46  ;;  %v291_v62 = vadd.f32 1e-05, %v259_v4 }
 0x11a   :  { %v210_v36 = vpop.xlane.xlu0 %209 }
 0x11b   :  { %v228_v44 = vmul.f32 %v210_v36, %v2658_v38  ;;  %2219 = vrsqrt.f32 %v291_v62  ;;  %vm421_vm7 = vweird.f32 %v291_v62 }
 0x11d   :  { %v260_v26 = vsub.f32 %v228_v44, %v244_v21 }
 0x11f   :  { %v2218_v49 = vpop.eup %2217  ;;  %v292_v1 = vadd.f32 1e-05, %v260_v26 }
 0x120   :  { %v406_v12 = vmul.f32 %v2218_v49, %v290_v27  ;;  %vm412_vm0 = vweird.f32 %v2218_v49  ;;  %v504_v27 = vadd.f32 %v2763_v45, %v484_v41 }
 0x121   :  { %vm413_vm4 = vmor %vm411_vm3, %vm412_vm0  ;;  %2221 = vrsqrt.f32 %v292_v1  ;;  %v3004_v14 = vpop.permute.xlu1 %568  ;;  %v2220_v23 = vpop.eup %2219  ;;  %vm431_vm9 = vweird.f32 %v292_v1  ;;  %vm1290_vm3 = vcmask 1043459  }
 0x122   :  { %v407_v16 = vmul.f32 %v2218_v49, %v406_v12  ;;  %734 = vmatmul.bf16.gmra.mxu0 %v610_v63  ;;  %783 = vmatmul.bf16.gmra.mxu1 %v610_v63  ;;  %v600_v8 = vmul.f32 %v2984_v55, %v504_v27  ;;  %v2997_v47 = vpop.xlane.xlu0 %142  ;;  %v416_v50 = vmul.f32 %v2220_v23, %v291_v62  ;;  %vm422_vm5 = vweird.f32 %v2220_v23 }
 0x123   :  { %vm423_vm8 = vmor %vm421_vm7, %vm422_vm5  ;;  %v3021_v61 = vmul.f32 %v2658_v38, %v2997_v47  ;;  %v2166_v47 = vld [vmem:[#allocation5 + $0x28] sm:$0xff]  ;;  %vm1296_vm5 = vcmask 1045509   ;;  %vm1302_vm7 = vcmask 1047559  }
 0x124   :  { %v408_v58 = vmul.f32 0.5, %v407_v16  ;;  %v611_v5 = vpack.c.bf16 %v600_v8, %v599_v56  ;;  %v417_v39 = vmul.f32 %v2220_v23, %v416_v50 }
 0x126   :  { %v409_v18 = vsub.f32 1.5, %v408_v58  ;;  %v418_v32 = vmul.f32 0.5, %v417_v39 }
 0x127   :  { %v2222_v58 = vpop.eup %2221 }
 0x128   :  { %v410_v37 = vmul.f32 %v2218_v49, %v409_v18  ;;  %v426_v30 = vmul.f32 %v2222_v58, %v292_v1  ;;  %v419_v48 = vsub.f32 1.5, %v418_v32  ;;  %vm432_vm6 = vweird.f32 %v2222_v58 }
 0x129   :  { %vm433_vm10 = vmor %vm431_vm9, %vm432_vm6  ;;  %vm1299_vm6 = vcmask 1046534   ;;  %vm1602_vm9 = vcmask 7168  }
 0x12a   :  { %v414_v54 = vsel %vm413_vm4, %v2218_v49, %v410_v37  ;;  %v485_v49 = vmul.f32 %v2756_v3, %v465_v11  ;;  %v427_v18 = vmul.f32 %v2222_v58, %v426_v30  ;;  %v420_v4 = vmul.f32 %v2220_v23, %v419_v48 }
 0x12b   :  { %v466_v9 = vmul.f32 %v414_v54, %v274_v17  ;;  %vm1293_vm4 = vcmask 1044484  }
 0x12c   :  { %v505_v63 = vadd.f32 %v2763_v45, %v485_v49  ;;  %v428_v7 = vmul.f32 0.5, %v427_v18  ;;  %v424_v56 = vsel %vm423_vm8, %v2220_v23, %v420_v4  ;;  %v276_v49 = vsub.f32 %v2680_v15, %v2973_v31  ;;  %v3028_v23 = vpop.permute.xlu1 %573 }
 0x12d   :  { %v486_v60 = vmul.f32 %v2756_v3, %v466_v9 }
 0x12e   :  { %v429_v24 = vsub.f32 1.5, %v428_v7 }
 0x12f   :  { %v506_v12 = vadd.f32 %v2763_v45, %v486_v60 }
 0x130   :  { %v430_v46 = vmul.f32 %v2222_v58, %v429_v24  ;;  %v2186_v24 = vld [vmem:[%s3429_s1 + $0x1] ss:$0 sm:$0xff] }
 0x131   :  { %v602_v0 = vmul.f32 %v3004_v14, %v506_v12 }
 0x132   :  { %739 = vmatmul.bf16.gmra.mxu0 %v611_v5  ;;  %788 = vmatmul.bf16.gmra.mxu1 %v611_v5  ;;  %v434_v60 = vsel %vm433_vm10, %v2222_v58, %v430_v46  ;;  %v275_v5 = vsub.f32 %v2666_v51, %v2963_v28 }
 0x133   :  { %v468_v12 = vmul.f32 %v434_v60, %v276_v49 }
 0x134   :  { %v467_v62 = vmul.f32 %v424_v56, %v275_v5  ;;  %v2162_v5 = vld [vmem:[#allocation5 + $0x8] sm:$0xff] }
 0x135   :  { %v3006_v16 = vpop.permute.xlu0 %563  ;;  %v488_v15 = vmul.f32 %v2756_v3, %v468_v12 }
 0x136   :  { %v601_v20 = vmul.f32 %v3006_v16, %v505_v63  ;;  %v2168_v63 = vld [vmem:[#allocation5 + $0x38] sm:$0xff]  ;;  %v487_v28 = vmul.f32 %v2756_v3, %v467_v62 }
 0x137   :  { %1354 = vmatpush.bf16.msrb.mxu0 %v2168_v63  ;;  %v508_v30 = vadd.f32 %v2763_v45, %v488_v15 }
 0x138   :  { %v612_v36 = vpack.c.bf16 %v602_v0, %v601_v20  ;;  %v246_v20 = vmul.f32 %v3021_v61, %v3021_v61  ;;  %v507_v50 = vadd.f32 %v2763_v45, %v487_v28 }
 0x13a   :  { %v603_v39 = vmul.f32 %v3028_v23, %v507_v50 }
 0x140   :  { %v720_v59 = vpop.f32.mrf.mxu0 }
 0x141   :  { %v809_v41 = vmul.f32 %v720_v59, %v2774_v6 }
 0x142   :  { %744 = vmatmul.bf16.gmra.mxu0 %v612_v36  ;;  %793 = vmatmul.bf16.gmra.mxu1 %v612_v36  ;;  %v2167_v36 = vld [vmem:[#allocation5 + $0x30] sm:$0xff] }
 0x143   :  { %v873_v10 = vmul.f32 %v2185_v43, %v809_v41  ;;  %v889_v17 = vpack.c.bf16 %v809_v41, %v809_v41  ;;  %1355 = vmatpush.bf16.msrb.mxu0 %v2167_v36  ;;  %v841_v36 = vld [vmem:[%s3429_s1] sm:$0x1] }
 0x145   :  { %v905_v42 = vpack.c.bf16 %v873_v10, %v873_v10  ;;  %v937_v21 = vunpack.c.l.b16 %v889_v17 }
 0x147   :  { %v985_v26 = vunpack.c.l.b16 %v905_v42  ;;  %1356 = vmatpush.bf16.msrb.mxu0 %v2166_v47 }
 0x148   :  { %v722_v37 = vpop.f32.mrf.mxu0 }
 0x149   :  { %v811_v44 = vmul.f32 %v722_v37, %v2772_v2 }
 0x14b   :  { %v874_v27 = vmul.f32 %v2185_v43, %v811_v44  ;;  %v890_v54 = vpack.c.bf16 %v811_v44, %v811_v44  ;;  %v2165_v43 = vld [vmem:[#allocation5 + $0x20] sm:$0xff] }
 0x14c   :  { %1357 = vmatpush.bf16.msrb.mxu0 %v2165_v43  ;;  %v1243_v43 = vpack.c.bf16 %v841_v36, %v841_v36 }
 0x14d   :  { %v906_v9 = vpack.c.bf16 %v874_v27, %v874_v27  ;;  %v938_v22 = vunpack.c.l.b16 %v890_v54  ;;  %v2164_v27 = vld [vmem:[#allocation5 + $0x18] sm:$0xff] }
 0x14e   :  { %v141_v8 = vpop.xlane.xlu2 %140 }
 0x14f   :  { %v953_v11 = vpack.c.b16 %v938_v22, %v937_v21  ;;  %v986_v19 = vunpack.c.l.b16 %v906_v9  ;;  %v3031_v58 = vmul.f32 %v2658_v38, %v141_v8  ;;  %v2163_v22 = vld [vmem:[#allocation5 + $0x10] sm:$0xff]  ;;  %v842_v8 = vld [vmem:[%s3429_s1 + $0x1] sm:$0x1] }
 0x150   :  { %1358 = vmatpush.bf16.msrb.mxu0 %v2164_v27  ;;  %v1244_v62 = vpack.c.bf16 %v842_v8, %v842_v8 }
 0x151   :  { %1153 = vmatmul.bf16.vlgmr.msra.gmra.mxu2 %v953_v11  ;;  %v1001_v34 = vpack.c.b16 %v986_v19, %v985_v26  ;;  %v245_v32 = vmul.f32 %v3031_v58, %v3031_v58 }
 0x153   :  { %1202 = vmatmul.bf16.vlgmr.msra.gmra.mxu3 %v1001_v34 }
 0x154   :  { %1359 = vmatpush.bf16.msrb.mxu0 %v2163_v22 }
 0x156   :  { %v214_v1 = vpop.xlane.xlu2 %213 }
 0x157   :  { %v230_v0 = vmul.f32 %v214_v1, %v2658_v38 }
 0x158   :  { %1360 = vmatpush.bf16.msrb.mxu0 %v2162_v5 }
 0x159   :  { %v262_v51 = vsub.f32 %v230_v0, %v246_v20  ;;  %v843_v0 = vld [vmem:[%s3429_s1 + $0x2] sm:$0x1] }
 0x15b   :  { %v294_v31 = vadd.f32 1e-05, %v262_v51 }
 0x15d   :  { %2223 = vrsqrt.f32 %v294_v31  ;;  %vm451_vm12 = vweird.f32 %v294_v31 }
 0x15e   :  { %v3035_v59 = vpop.permute.xlu2 %578 }
 0x15f   :  { %v604_v18 = vmul.f32 %v3035_v59, %v508_v30  ;;  %v278_v30 = vsub.f32 %v2728_v33, %v3021_v61  ;;  %v845_v33 = vld [vmem:[%s3429_s1 + $0x4] sm:$0x1] }
 0x160   :  { %v212_v41 = vpop.xlane.xlu0 %211  ;;  %v1247_v22 = vpack.c.bf16 %v845_v33, %v845_v33 }
 0x161   :  { %v229_v7 = vmul.f32 %v212_v41, %v2658_v38  ;;  %v725_v10 = vpop.f32.mrf.mxu0  ;;  %v613_v37 = vpack.c.bf16 %v604_v18, %v603_v39  ;;  %v1245_v39 = vpack.c.bf16 %v843_v0, %v843_v0  ;;  %v2161_v18 = vld [vmem:[#allocation5] sm:$0xff] }
 0x162   :  { %v813_v48 = vmul.f32 %v725_v10, %v2831_v35  ;;  %v844_v41 = vld [vmem:[%s3429_s1 + $0x3] sm:$0x1]  ;;  %1361 = vmatpush.bf16.msrb.mxu0 %v2161_v18 }
 0x163   :  { %v2224_v17 = vpop.eup %2223  ;;  %v261_v44 = vsub.f32 %v229_v7, %v245_v32  ;;  %749 = vmatmul.bf16.gmra.mxu0 %v613_v37  ;;  %798 = vmatmul.bf16.gmra.mxu1 %v613_v37  ;;  %v1276_v7 = vunpack.c.l.b16 %v1244_v62  ;;  %v1246_v61 = vpack.c.bf16 %v844_v41, %v844_v41 }
 0x164   :  { %v446_v42 = vmul.f32 %v2224_v17, %v294_v31  ;;  %v875_v9 = vmul.f32 %v2186_v24, %v813_v48  ;;  %v891_v11 = vpack.c.bf16 %v813_v48, %v813_v48  ;;  %vm452_vm11 = vweird.f32 %v2224_v17 }
 0x165   :  { %v293_v54 = vadd.f32 1e-05, %v261_v44  ;;  %vm3056_vm13 = vmor %vm451_vm12, %vm452_vm11  ;;  %v3067_v44 = vpop.permute.xlu1 %583  ;;  %v1283_v27 = vrot.slane %v1276_v7, 7  ;;  %v2187_v7 = vld [vmem:[%s3429_s1 + $0x2] ss:$0 sm:$0xff] }
 0x166   :  { %v447_v21 = vmul.f32 %v2224_v17, %v446_v42  ;;  %v907_v19 = vpack.c.bf16 %v875_v9, %v875_v9  ;;  %v939_v63 = vunpack.c.l.b16 %v891_v11 }
 0x167   :  { %2225 = vrsqrt.f32 %v293_v54  ;;  %vm441_vm15 = vweird.f32 %v293_v54 }
 0x168   :  { %v448_v38 = vmul.f32 0.5, %v447_v21  ;;  %v987_v28 = vunpack.c.l.b16 %v907_v19  ;;  %v277_v21 = vsub.f32 %v2822_v13, %v3031_v58 }
 0x169   :  { %v727_v4 = vpop.f32.mrf.mxu0 }
 0x16a   :  { %v449_v46 = vsub.f32 1.5, %v448_v38  ;;  %v815_v26 = vmul.f32 %v727_v4, %v2835_v25  ;;  %v846_v38 = vld [vmem:[%s3429_s1 + $0x5] sm:$0x1] }
 0x16b   :  { %v1248_v13 = vpack.c.bf16 %v846_v38, %v846_v38 }
 0x16c   :  { %v450_v34 = vmul.f32 %v2224_v17, %v449_v46  ;;  %v876_v56 = vmul.f32 %v2186_v24, %v815_v26  ;;  %v892_v60 = vpack.c.bf16 %v815_v26, %v815_v26  ;;  %v1275_v24 = vunpack.c.l.b16 %v1243_v43 }
 0x16d   :  { %v2226_v49 = vpop.eup %2225  ;;  %v1278_v46 = vunpack.c.l.b16 %v1246_v61 }
 0x16e   :  { %v436_v12 = vmul.f32 %v2226_v49, %v293_v54  ;;  %v908_v1 = vpack.c.bf16 %v876_v56, %v876_v56  ;;  %v940_v20 = vunpack.c.l.b16 %v892_v60  ;;  %v454_v50 = vsel %vm3056_vm13, %v2224_v17, %v450_v34  ;;  %v847_v54 = vld [vmem:[%s3429_s1 + $0x6] sm:$0x1] }
 0x16f   :  { %v470_v37 = vmul.f32 %v454_v50, %v278_v30  ;;  %vm442_vm14 = vweird.f32 %v2226_v49  ;;  %v1277_v17 = vunpack.c.l.b16 %v1245_v39  ;;  %v1285_v26 = vsel %vm1284_vm1, %v1283_v27, %v1275_v24 }
 0x170   :  { %v437_v15 = vmul.f32 %v2226_v49, %v436_v12  ;;  %v954_v31 = vpack.c.b16 %v940_v20, %v939_v63  ;;  %v988_v47 = vunpack.c.l.b16 %v908_v1  ;;  %vm443_vm0 = vmor %vm441_vm15, %vm442_vm14  ;;  %v1279_v34 = vunpack.c.l.b16 %v1247_v22  ;;  %v3087_v12 = vpop.permute.xlu1 %588 }
 0x171   :  { %v490_v9 = vmul.f32 %v2756_v3, %v470_v37  ;;  %v1286_v11 = vrot.slane %v1277_v17, 6  ;;  %v1289_v56 = vrot.slane %v1278_v46, 5  ;;  %v1249_v62 = vpack.c.bf16 %v847_v54, %v847_v54 }
 0x172   :  { %v438_v32 = vmul.f32 0.5, %v437_v15  ;;  %1158 = vmatmul.bf16.gmra.mxu2 %v954_v31  ;;  %v1002_v10 = vpack.c.b16 %v988_v47, %v987_v28  ;;  %v1280_v63 = vunpack.c.l.b16 %v1248_v13  ;;  %v1292_v20 = vrot.slane %v1279_v34, 4 }
 0x173   :  { %v510_v19 = vadd.f32 %v2763_v45, %v490_v9  ;;  %v1288_v5 = vsel %vm1287_vm2, %v1286_v11, %v1285_v26  ;;  %v2188_v11 = vld [vmem:[%s3429_s1 + $0x3] ss:$0 sm:$0xff] }
 0x174   :  { %v439_v48 = vsub.f32 1.5, %v438_v32  ;;  %1207 = vmatmul.bf16.gmra.mxu3 %v1002_v10  ;;  %v1291_v36 = vsel %vm1290_vm3, %v1289_v56, %v1288_v5  ;;  %v1295_v28 = vrot.slane %v1280_v63, 3 }
 0x175   :  { %v1294_v15 = vsel %vm1293_vm4, %v1292_v20, %v1291_v36  ;;  %v2189_v36 = vld [vmem:[%s3429_s1 + $0x4] ss:$0 sm:$0xff] }
 0x176   :  { %v440_v42 = vmul.f32 %v2226_v49, %v439_v48  ;;  %v1297_v50 = vsel %vm1296_vm5, %v1295_v28, %v1294_v15 }
 0x178   :  { %v444_v4 = vsel %vm443_vm0, %v2226_v49, %v440_v42  ;;  %v848_v49 = vld [vmem:[%s3429_s1 + $0x7] sm:$0x1] }
 0x179   :  { %v469_v8 = vmul.f32 %v444_v4, %v277_v21  ;;  %v1250_v0 = vpack.c.bf16 %v848_v49, %v848_v49 }
 0x17b   :  { %v489_v58 = vmul.f32 %v2756_v3, %v469_v8  ;;  %v606_v3 = vmul.f32 %v3087_v12, %v510_v19  ;;  %v1282_v31 = vunpack.c.l.b16 %v1250_v0 }
 0x17d   :  { %v509_v60 = vadd.f32 %v2763_v45, %v489_v58  ;;  %v1281_v45 = vunpack.c.l.b16 %v1249_v62  ;;  %v1301_v30 = vrot.slane %v1282_v31, 1 }
 0x17f   :  { %v605_v1 = vmul.f32 %v3067_v44, %v509_v60  ;;  %v1298_v47 = vrot.slane %v1281_v45, 2 }
 0x181   :  { %v614_v51 = vpack.c.bf16 %v606_v3, %v605_v1  ;;  %v1300_v39 = vsel %vm1299_vm6, %v1298_v47, %v1297_v50 }
 0x182   :  { %v1303_v18 = vsel %vm1302_vm7, %v1301_v30, %v1300_v39 }
 0x183   :  { %754 = vmatmul.bf16.gmra.mxu0 %v614_v51  ;;  %803 = vmatmul.bf16.gmra.mxu1 %v614_v51  ;;  %v1304_v43 = vpack.c.b16 %v1303_v18, %v1303_v18 }
 0x18f   :  { %v730_v41 = vpop.f32.mrf.mxu0 }
 0x190   :  { %v817_v32 = vmul.f32 %v730_v41, %v2902_v52 }
 0x192   :  { %v877_v10 = vmul.f32 %v2187_v7, %v817_v32  ;;  %v893_v48 = vpack.c.bf16 %v817_v32, %v817_v32 }
 0x193   :  { %1362 = vmatmul.bf16.vlgmr.msrb.gmra.mxu0 %v1304_v43 }
 0x194   :  { %v909_v61 = vpack.c.bf16 %v877_v10, %v877_v10  ;;  %v941_v42 = vunpack.c.l.b16 %v893_v48  ;;  %v2190_v48 = vld [vmem:[%s3429_s1 + $0x5] ss:$0 sm:$0xff] }
 0x196   :  { %v989_v38 = vunpack.c.l.b16 %v909_v61 }
 0x197   :  { %v732_v37 = vpop.f32.mrf.mxu0 }
 0x198   :  { %v819_v33 = vmul.f32 %v732_v37, %v2919_v53 }
 0x19a   :  { %v878_v17 = vmul.f32 %v2187_v7, %v819_v33  ;;  %v894_v24 = vpack.c.bf16 %v819_v33, %v819_v33 }
 0x19c   :  { %v910_v27 = vpack.c.bf16 %v878_v17, %v878_v17  ;;  %v942_v21 = vunpack.c.l.b16 %v894_v24 }
 0x19e   :  { %v955_v9 = vpack.c.b16 %v942_v21, %v941_v42  ;;  %v990_v22 = vunpack.c.l.b16 %v910_v27 }
 0x19f   :  { %v735_v4 = vpop.f32.mrf.mxu0 }
 0x1a0   :  { %1163 = vmatmul.bf16.gmra.mxu2 %v955_v9  ;;  %v1003_v46 = vpack.c.b16 %v990_v22, %v989_v38  ;;  %v821_v8 = vmul.f32 %v735_v4, %v2906_v29 }
 0x1a2   :  { %1212 = vmatmul.bf16.gmra.mxu3 %v1003_v46  ;;  %v879_v26 = vmul.f32 %v2188_v11, %v821_v8  ;;  %v895_v13 = vpack.c.bf16 %v821_v8, %v821_v8 }
 0x1a4   :  { %v911_v19 = vpack.c.bf16 %v879_v26, %v879_v26  ;;  %v943_v60 = vunpack.c.l.b16 %v895_v13  ;;  %v2191_v13 = vld [vmem:[%s3429_s1 + $0x6] ss:$0 sm:$0xff] }
 0x1a6   :  { %v991_v63 = vunpack.c.l.b16 %v911_v19 }
 0x1a7   :  { %v737_v54 = vpop.f32.mrf.mxu0 }
 0x1a8   :  { %v823_v58 = vmul.f32 %v737_v54, %v2941_v40 }
 0x1aa   :  { %v880_v34 = vmul.f32 %v2188_v11, %v823_v58  ;;  %v896_v56 = vpack.c.bf16 %v823_v58, %v823_v58 }
 0x1ac   :  { %v912_v5 = vpack.c.bf16 %v880_v34, %v880_v34  ;;  %v944_v49 = vunpack.c.l.b16 %v896_v56 }
 0x1ae   :  { %v956_v62 = vpack.c.b16 %v944_v49, %v943_v60  ;;  %v992_v1 = vunpack.c.l.b16 %v912_v5 }
 0x1af   :  { %v740_v3 = vpop.f32.mrf.mxu0 }
 0x1b0   :  { %1168 = vmatmul.bf16.gmra.mxu2 %v956_v62  ;;  %v1004_v20 = vpack.c.b16 %v992_v1, %v991_v63  ;;  %v825_v0 = vmul.f32 %v740_v3, %v2954_v57 }
 0x1b2   :  { %1217 = vmatmul.bf16.gmra.mxu3 %v1004_v20  ;;  %v881_v51 = vmul.f32 %v2189_v36, %v825_v0  ;;  %v897_v28 = vpack.c.bf16 %v825_v0, %v825_v0 }
 0x1b4   :  { %v913_v31 = vpack.c.bf16 %v881_v51, %v881_v51  ;;  %v945_v30 = vunpack.c.l.b16 %v897_v28 }
 0x1b6   :  { %v993_v43 = vunpack.c.l.b16 %v913_v31 }
 0x1b7   :  { %v742_v45 = vpop.f32.mrf.mxu0 }
 0x1b8   :  { %v827_v15 = vmul.f32 %v742_v45, %v2984_v55 }
 0x1ba   :  { %v882_v47 = vmul.f32 %v2189_v36, %v827_v15  ;;  %v898_v50 = vpack.c.bf16 %v827_v15, %v827_v15 }
 0x1bc   :  { %v914_v39 = vpack.c.bf16 %v882_v47, %v882_v47  ;;  %v946_v18 = vunpack.c.l.b16 %v898_v50  ;;  %v2192_v47 = vld [vmem:[%s3429_s1 + $0x7] ss:$0 sm:$0xff] }
 0x1be   :  { %v957_v41 = vpack.c.b16 %v946_v18, %v945_v30  ;;  %v994_v32 = vunpack.c.l.b16 %v914_v39 }
 0x1bf   :  { %v745_v7 = vpop.f32.mrf.mxu0 }
 0x1c0   :  { %1173 = vmatmul.bf16.gmra.mxu2 %v957_v41  ;;  %v1005_v10 = vpack.c.b16 %v994_v32, %v993_v43  ;;  %v829_v37 = vmul.f32 %v745_v7, %v3006_v16 }
 0x1c2   :  { %1222 = vmatmul.bf16.gmra.mxu3 %v1005_v10  ;;  %v883_v33 = vmul.f32 %v2190_v48, %v829_v37  ;;  %v899_v17 = vpack.c.bf16 %v829_v37, %v829_v37 }
 0x1c4   :  { %v915_v42 = vpack.c.bf16 %v883_v33, %v883_v33  ;;  %v947_v9 = vunpack.c.l.b16 %v899_v17 }
 0x1c6   :  { %v995_v46 = vunpack.c.l.b16 %v915_v42 }
 0x1c7   :  { %v747_v61 = vpop.f32.mrf.mxu0 }
 0x1c8   :  { %v831_v24 = vmul.f32 %v747_v61, %v3004_v14 }
 0x1ca   :  { %v884_v27 = vmul.f32 %v2190_v48, %v831_v24  ;;  %v900_v21 = vpack.c.bf16 %v831_v24, %v831_v24  ;;  %v1423_v48 = vlaneseq }
 0x1cc   :  { %v916_v38 = vpack.c.bf16 %v884_v27, %v884_v27  ;;  %v948_v22 = vunpack.c.l.b16 %v900_v21 }
 0x1ce   :  { %v958_v4 = vpack.c.b16 %v948_v22, %v947_v9  ;;  %v996_v8 = vunpack.c.l.b16 %v916_v38  ;;  %v3123_v38 = vand.u32 127, %v1423_v48 }
 0x1d0   :  { %1178 = vmatmul.bf16.gmra.mxu2 %v958_v4  ;;  %v1006_v11 = vpack.c.b16 %v996_v8, %v995_v46  ;;  %vm1425_vm8 = vcmp.lt.s32.totalorder %v3123_v38, 4 }
 0x1d2   :  { %1227 = vmatmul.bf16.gmra.mxu3 %v1006_v11 }
 0x1d4   :  { %v1154_v45 = vpop.f32.mrf.mxu2 }
 0x1d6   :  { %v1203_v51 = vpop.f32.mrf.mxu3 }
 0x1d7   :  { %v1204_v21 = vadd.f32 %v1203_v51, %v1154_v45 }
 0x1dc   :  { %v1156_v50 = vpop.f32.mrf.mxu2 }
 0x1de   :  { %v1205_v15 = vpop.f32.mrf.mxu3 }
 0x1df   :  { %v1206_v22 = vadd.f32 %v1205_v15, %v1156_v50 }
 0x1e0   :  { %v750_v26 = vpop.f32.mrf.mxu0 }
 0x1e1   :  { %v833_v54 = vmul.f32 %v750_v26, %v3028_v23 }
 0x1e3   :  { %v885_v58 = vmul.f32 %v2191_v13, %v833_v54  ;;  %v901_v34 = vpack.c.bf16 %v833_v54, %v833_v54 }
 0x1e5   :  { %v917_v60 = vpack.c.bf16 %v885_v58, %v885_v58  ;;  %v949_v62 = vunpack.c.l.b16 %v901_v34 }
 0x1e7   :  { %v997_v20 = vunpack.c.l.b16 %v917_v60 }
 0x1e8   :  { %v752_v19 = vpop.f32.mrf.mxu0 }
 0x1e9   :  { %v835_v56 = vmul.f32 %v752_v19, %v3035_v59 }
 0x1eb   :  { %v886_v5 = vmul.f32 %v2191_v13, %v835_v56  ;;  %v902_v49 = vpack.c.bf16 %v835_v56, %v835_v56 }
 0x1ed   :  { %v918_v63 = vpack.c.bf16 %v886_v5, %v886_v5  ;;  %v950_v1 = vunpack.c.l.b16 %v902_v49 }
 0x1ef   :  { %v959_v3 = vpack.c.b16 %v950_v1, %v949_v62  ;;  %v998_v0 = vunpack.c.l.b16 %v918_v63 }
 0x1f1   :  { %1183 = vmatmul.bf16.gmra.mxu2 %v959_v3  ;;  %v1007_v36 = vpack.c.b16 %v998_v0, %v997_v20 }
 0x1f3   :  { %1232 = vmatmul.bf16.gmra.mxu3 %v1007_v36 }
 0x1f5   :  { %v1159_v37 = vpop.f32.mrf.mxu2 }
 0x1f7   :  { %v1208_v43 = vpop.f32.mrf.mxu3 }
 0x1f8   :  { %v1209_v11 = vadd.f32 %v1208_v43, %v1159_v37 }
 0x1fd   :  { %v1161_v60 = vpop.f32.mrf.mxu2 }
 0x1ff   :  { %v1210_v58 = vpop.f32.mrf.mxu3 }
 0x200   :  { %v755_v28 = vpop.f32.mrf.mxu0  ;;  %v1211_v5 = vadd.f32 %v1210_v58, %v1161_v60 }
 0x201   :  { %v837_v31 = vmul.f32 %v755_v28, %v3067_v44 }
 0x203   :  { %v887_v30 = vmul.f32 %v2192_v47, %v837_v31  ;;  %v903_v18 = vpack.c.bf16 %v837_v31, %v837_v31 }
 0x205   :  { %v919_v32 = vpack.c.bf16 %v887_v30, %v887_v30  ;;  %v951_v33 = vunpack.c.l.b16 %v903_v18 }
 0x207   :  { %v999_v42 = vunpack.c.l.b16 %v919_v32 }
 0x208   :  { %v757_v39 = vpop.f32.mrf.mxu0 }
 0x209   :  { %v839_v41 = vmul.f32 %v757_v39, %v3087_v12 }
 0x20b   :  { %v888_v7 = vmul.f32 %v2192_v47, %v839_v41  ;;  %v904_v10 = vpack.c.bf16 %v839_v41, %v839_v41 }
 0x20d   :  { %v920_v61 = vpack.c.bf16 %v888_v7, %v888_v7  ;;  %v952_v17 = vunpack.c.l.b16 %v904_v10 }
 0x20f   :  { %v960_v24 = vpack.c.b16 %v952_v17, %v951_v33  ;;  %v1000_v27 = vunpack.c.l.b16 %v920_v61 }
 0x210   :  { %v3121_v9 = vpop.f32.mrf.mxu0 }
 0x211   :  { %1188 = vmatmul.bf16.gmra.mxu2 %v960_v24  ;;  %v1008_v4 = vpack.c.b16 %v1000_v27, %v999_v42  ;;  %v1375_v46 = vperm.slane %v3121_v9, 0  ;;  %v1368_v8 = vrot.slane %v3121_v9, 1  ;;  %v1369_v36 = vrot.slane %v3121_v9, 2 }
 0x212   :  { %v1370_v32 = vrot.slane %v3121_v9, 3 }
 0x213   :  { %1237 = vmatmul.bf16.gmra.mxu3 %v1008_v4  ;;  %v1392_v26 = vadd.f32 %v1375_v46, %v1206_v22  ;;  %v1391_v54 = vadd.f32 %v1375_v46, %v1204_v21  ;;  %v1376_v13 = vperm.slane %v1368_v8, 0  ;;  %v1377_v28 = vperm.slane %v1369_v36, 0 }
 0x214   :  { %v1378_v37 = vperm.slane %v1370_v32, 0  ;;  %v1371_v46 = vrot.slane %v3121_v9, 4 }
 0x215   :  { %v1408_v19 = vmul.f32 %v1392_v26, %v2772_v2  ;;  %v1407_v34 = vmul.f32 %v1391_v54, %v2774_v6  ;;  %v1393_v56 = vadd.f32 %v1376_v13, %v1209_v11  ;;  %v1394_v20 = vadd.f32 %v1376_v13, %v1211_v5 }
 0x216   :  { %v1379_v26 = vperm.slane %v1371_v46, 0 }
 0x217   :  { %v3132_v49 = vsel %vm1425_vm8, %v1408_v19, -1e+30  ;;  %v3136_v62 = vsel %vm1425_vm8, %v1407_v34, -1e+30  ;;  %v1409_v63 = vmul.f32 %v1393_v56, %v2831_v35  ;;  %v1410_v0 = vmul.f32 %v1394_v20, %v2835_v25 }
 0x218   :  { %1444 = vmax.xlane.f32.xlu2 %v3132_v49  ;;  %1442 = vmax.xlane.f32.xlu1 %v3136_v62  ;;  %v1365_v1 = vpop.f32.mrf.mxu0  ;;  %v1372_v20 = vrot.slane %v3121_v9, 5 }
 0x219   :  { %v3143_v3 = vsel %vm1425_vm8, %v1409_v63, -1e+30  ;;  %v3150_v51 = vsel %vm1425_vm8, %v1410_v0, -1e+30 }
 0x21a   :  { %1446 = vmax.xlane.f32.xlu0 %v3143_v3 }
 0x222   :  { %1448 = vmax.xlane.f32.xlu0 %v3150_v51 }
 0x223   :  { %v1164_v45 = vpop.f32.mrf.mxu2 }
 0x225   :  { %v1213_v15 = vpop.f32.mrf.mxu3 }
 0x226   :  { %v1214_v31 = vadd.f32 %v1213_v15, %v1164_v45  ;;  %v1380_v45 = vperm.slane %v1372_v20, 0 }
 0x228   :  { %v1395_v47 = vadd.f32 %v1377_v28, %v1214_v31 }
 0x22a   :  { %v1411_v50 = vmul.f32 %v1395_v47, %v2902_v52 }
 0x22b   :  { %v1166_v30 = vpop.f32.mrf.mxu2 }
 0x22c   :  { %v3156_v39 = vsel %vm1425_vm8, %v1411_v50, -1e+30 }
 0x22d   :  { %v1215_v18 = vpop.f32.mrf.mxu3  ;;  %1450 = vmax.xlane.f32.xlu0 %v3156_v39 }
 0x22e   :  { %v1216_v41 = vadd.f32 %v1215_v18, %v1166_v30 }
 0x230   :  { %v1396_v43 = vadd.f32 %v1377_v28, %v1216_v41 }
 0x232   :  { %v1412_v7 = vmul.f32 %v1396_v43, %v2919_v53 }
 0x233   :  { %v1169_v10 = vpop.f32.mrf.mxu2 }
 0x234   :  { %v3163_v48 = vsel %vm1425_vm8, %v1412_v7, -1e+30 }
 0x235   :  { %v1218_v33 = vpop.f32.mrf.mxu3  ;;  %1452 = vmax.xlane.f32.xlu0 %v3163_v48 }
 0x236   :  { %v1219_v61 = vadd.f32 %v1218_v33, %v1169_v10 }
 0x238   :  { %v1397_v17 = vadd.f32 %v1378_v37, %v1219_v61 }
 0x23a   :  { %v1413_v24 = vmul.f32 %v1397_v17, %v2906_v29 }
 0x23b   :  { %v1171_v42 = vpop.f32.mrf.mxu2 }
 0x23c   :  { %v3169_v27 = vsel %vm1425_vm8, %v1413_v24, -1e+30 }
 0x23d   :  { %v1220_v21 = vpop.f32.mrf.mxu3  ;;  %1454 = vmax.xlane.f32.xlu0 %v3169_v27 }
 0x23e   :  { %v1221_v22 = vadd.f32 %v1220_v21, %v1171_v42 }
 0x240   :  { %v1398_v4 = vadd.f32 %v1378_v37, %v1221_v22  ;;  %v1373_v37 = vrot.slane %v3121_v9, 6 }
 0x242   :  { %v1414_v8 = vmul.f32 %v1398_v4, %v2941_v40  ;;  %v1381_v24 = vperm.slane %v1373_v37, 0 }
 0x243   :  { %v1174_v11 = vpop.f32.mrf.mxu2 }
 0x244   :  { %v3176_v54 = vsel %vm1425_vm8, %v1414_v8, -1e+30 }
 0x245   :  { %v1223_v13 = vpop.f32.mrf.mxu3  ;;  %1456 = vmax.xlane.f32.xlu1 %v3176_v54 }
 0x246   :  { %v1224_v58 = vadd.f32 %v1223_v13, %v1174_v11 }
 0x248   :  { %v1399_v19 = vadd.f32 %v1379_v26, %v1224_v58 }
 0x24a   :  { %v1415_v34 = vmul.f32 %v1399_v19, %v2954_v57 }
 0x24b   :  { %v1176_v56 = vpop.f32.mrf.mxu2 }
 0x24c   :  { %v3182_v60 = vsel %vm1425_vm8, %v1415_v34, -1e+30 }
 0x24d   :  { %v1225_v5 = vpop.f32.mrf.mxu3  ;;  %1458 = vmax.xlane.f32.xlu2 %v3182_v60 }
 0x24e   :  { %v1226_v63 = vadd.f32 %v1225_v5, %v1176_v56  ;;  %v1374_v5 = vrot.slane %v3121_v9, 7 }
 0x250   :  { %v1400_v1 = vadd.f32 %v1379_v26, %v1226_v63 }
 0x252   :  { %v1416_v0 = vmul.f32 %v1400_v1, %v2984_v55 }
 0x253   :  { %v1179_v36 = vpop.f32.mrf.mxu2 }
 0x254   :  { %v3189_v28 = vsel %vm1425_vm8, %v1416_v0, -1e+30 }
 0x255   :  { %v1228_v15 = vpop.f32.mrf.mxu3  ;;  %1460 = vmax.xlane.f32.xlu0 %v3189_v28 }
 0x256   :  { %v1229_v31 = vadd.f32 %v1228_v15, %v1179_v36 }
 0x258   :  { %v1401_v47 = vadd.f32 %v1380_v45, %v1229_v31 }
 0x25a   :  { %v1417_v50 = vmul.f32 %v1401_v47, %v3006_v16  ;;  %v1382_v47 = vperm.slane %v1374_v5, 0 }
 0x25b   :  { %v1181_v18 = vpop.f32.mrf.mxu2 }
 0x25c   :  { %v3195_v30 = vsel %vm1425_vm8, %v1417_v50, -1e+30 }
 0x25d   :  { %v1230_v41 = vpop.f32.mrf.mxu3  ;;  %1462 = vmax.xlane.f32.xlu1 %v3195_v30 }
 0x25e   :  { %v1231_v43 = vadd.f32 %v1230_v41, %v1181_v18 }
 0x260   :  { %v1402_v32 = vadd.f32 %v1380_v45, %v1231_v43 }
 0x262   :  { %v1418_v7 = vmul.f32 %v1402_v32, %v3004_v14 }
 0x264   :  { %v3201_v10 = vsel %vm1425_vm8, %v1418_v7, -1e+30 }
 0x265   :  { %1464 = vmax.xlane.f32.xlu2 %v3201_v10 }
 0x274   :  { %v1184_v33 = vpop.f32.mrf.mxu2 }
 0x276   :  { %v1233_v61 = vpop.f32.mrf.mxu3 }
 0x277   :  { %v1234_v17 = vadd.f32 %v1233_v61, %v1184_v33 }
 0x279   :  { %v1403_v42 = vadd.f32 %v1381_v24, %v1234_v17 }
 0x27b   :  { %v1419_v21 = vmul.f32 %v1403_v42, %v3028_v23 }
 0x27c   :  { %v1186_v4 = vpop.f32.mrf.mxu2 }
 0x27d   :  { %v3208_v22 = vsel %vm1425_vm8, %v1419_v21, -1e+30 }
 0x27e   :  { %v1235_v46 = vpop.f32.mrf.mxu3  ;;  %1466 = vmax.xlane.f32.xlu0 %v3208_v22 }
 0x27f   :  { %v1236_v8 = vadd.f32 %v1235_v46, %v1186_v4 }
 0x281   :  { %v1404_v11 = vadd.f32 %v1381_v24, %v1236_v8 }
 0x283   :  { %v1420_v26 = vmul.f32 %v1404_v11, %v3035_v59 }
 0x285   :  { %v3214_v13 = vsel %vm1425_vm8, %v1420_v26, -1e+30 }
 0x286   :  { %1468 = vmax.xlane.f32.xlu1 %v3214_v13 }
 0x28b   :  { %v1443_v58 = vpop.xlane.xlu1 %1442  ;;  %v1445_v63 = vpop.xlane.xlu2 %1444 }
 0x28c   :  { %v1474_v19 = vsub.f32 %v3136_v62, %v1443_v58  ;;  %v1475_v15 = vsub.f32 %v3132_v49, %v1445_v63 }
 0x28d   :  { %v1447_v34 = vpop.xlane.xlu0 %1446 }
 0x28e   :  { %v1490_v56 = vmul.f32 1.442695, %v1474_v19  ;;  %v1492_v18 = vmul.f32 1.442695, %v1475_v15 }
 0x290   :  { %2227 = vpow2.f32 %v1490_v56 }
 0x294   :  { %v1189_v1 = vpop.f32.mrf.mxu2 }
 0x295   :  { %v1449_v20 = vpop.xlane.xlu0 %1448 }
 0x296   :  { %v1477_v0 = vsub.f32 %v3150_v51, %v1449_v20  ;;  %v1238_v36 = vpop.f32.mrf.mxu3  ;;  %v3220_v45 = vpop.eup %2227  ;;  %v1476_v51 = vsub.f32 %v3143_v3, %v1447_v34 }
 0x297   :  { %v1239_v31 = vadd.f32 %v1238_v36, %v1189_v1  ;;  %1522 = vadd.xlane.f32.xlu1 %v3220_v45 }
 0x298   :  { %v1496_v50 = vmul.f32 1.442695, %v1477_v0  ;;  %v1494_v17 = vmul.f32 1.442695, %v1476_v51 }
 0x299   :  { %v1405_v62 = vadd.f32 %v1382_v47, %v1239_v31 }
 0x29a   :  { %2229 = vpow2.f32 %v1496_v50 }
 0x29b   :  { %v1421_v9 = vmul.f32 %v1405_v62, %v3067_v44  ;;  %2231 = vpow2.f32 %v1492_v18 }
 0x29c   :  { %v1191_v43 = vpop.f32.mrf.mxu2  ;;  %2233 = vpow2.f32 %v1494_v17 }
 0x29d   :  { %v3227_v41 = vsel %vm1425_vm8, %v1421_v9, -1e+30 }
 0x29e   :  { %v1240_v32 = vpop.f32.mrf.mxu3  ;;  %1470 = vmax.xlane.f32.xlu2 %v3227_v41 }
 0x29f   :  { %v1241_v49 = vadd.f32 %v1240_v32, %v1191_v43 }
 0x2a0   :  { %v3231_v7 = vpop.eup %2229  ;;  %v1451_v37 = vpop.xlane.xlu0 %1450 }
 0x2a1   :  { %v1406_v33 = vadd.f32 %v1382_v47, %v1241_v49  ;;  %v1478_v61 = vsub.f32 %v3156_v39, %v1451_v37  ;;  %1528 = vadd.xlane.f32.xlu1 %v3231_v7  ;;  %v3236_v21 = vpop.eup %2231 }
 0x2a2   :  { %v3245_v8 = vpop.eup %2233 }
 0x2a3   :  { %v1498_v24 = vmul.f32 1.442695, %v1478_v61  ;;  %v1422_v42 = vmul.f32 %v1406_v33, %v3087_v12 }
 0x2a5   :  { %v3240_v3 = vsel %vm1425_vm8, %v1422_v42, -1e+30  ;;  %2235 = vpow2.f32 %v1498_v24 }
 0x2a6   :  { %1472 = vmax.xlane.f32.xlu0 %v3240_v3  ;;  %1524 = vadd.xlane.f32.xlu2 %v3236_v21 }
 0x2a8   :  { %v1453_v4 = vpop.xlane.xlu0 %1452 }
 0x2a9   :  { %v1479_v39 = vsub.f32 %v3163_v48, %v1453_v4 }
 0x2ab   :  { %v1500_v46 = vmul.f32 1.442695, %v1479_v39  ;;  %v3247_v11 = vpop.eup %2235 }
 0x2ad   :  { %2237 = vpow2.f32 %v1500_v46 }
 0x2ae   :  { %1526 = vadd.xlane.f32.xlu0 %v3245_v8  ;;  %1530 = vadd.xlane.f32.xlu2 %v3247_v11 }
 0x2b0   :  { %v1455_v38 = vpop.xlane.xlu0 %1454 }
 0x2b1   :  { %v1480_v26 = vsub.f32 %v3169_v27, %v1455_v38 }
 0x2b3   :  { %v1502_v58 = vmul.f32 1.442695, %v1480_v26  ;;  %v3252_v19 = vpop.eup %2237 }
 0x2b5   :  { %2239 = vpow2.f32 %v1502_v58 }
 0x2b6   :  { %1532 = vadd.xlane.f32.xlu0 %v3252_v19 }
 0x2b8   :  { %v1457_v48 = vpop.xlane.xlu1 %1456 }
 0x2b9   :  { %v1481_v34 = vsub.f32 %v3176_v54, %v1457_v48 }
 0x2bb   :  { %v3256_v56 = vpop.eup %2239  ;;  %v1504_v5 = vmul.f32 1.442695, %v1481_v34 }
 0x2bc   :  { %1534 = vadd.xlane.f32.xlu1 %v3256_v56 }
 0x2bd   :  { %2241 = vpow2.f32 %v1504_v5 }
 0x2c0   :  { %v1459_v63 = vpop.xlane.xlu2 %1458 }
 0x2c1   :  { %v1482_v1 = vsub.f32 %v3182_v60, %v1459_v63 }
 0x2c3   :  { %v3260_v20 = vpop.eup %2241  ;;  %v1506_v27 = vmul.f32 1.442695, %v1482_v1 }
 0x2c4   :  { %1536 = vadd.xlane.f32.xlu2 %v3260_v20 }
 0x2c5   :  { %2243 = vpow2.f32 %v1506_v27 }
 0x2c8   :  { %v1461_v0 = vpop.xlane.xlu0 %1460 }
 0x2c9   :  { %v1483_v36 = vsub.f32 %v3189_v28, %v1461_v0 }
 0x2cb   :  { %v3264_v15 = vpop.eup %2243  ;;  %v1508_v54 = vmul.f32 1.442695, %v1483_v36 }
 0x2cc   :  { %1538 = vadd.xlane.f32.xlu0 %v3264_v15 }
 0x2cd   :  { %2245 = vpow2.f32 %v1508_v54 }
 0x2d0   :  { %v1463_v31 = vpop.xlane.xlu1 %1462 }
 0x2d1   :  { %v1484_v47 = vsub.f32 %v3195_v30, %v1463_v31 }
 0x2d3   :  { %v3268_v50 = vpop.eup %2245  ;;  %v1510_v60 = vmul.f32 1.442695, %v1484_v47 }
 0x2d4   :  { %1540 = vadd.xlane.f32.xlu1 %v3268_v50 }
 0x2d5   :  { %2247 = vpow2.f32 %v1510_v60 }
 0x2d8   :  { %v1465_v62 = vpop.xlane.xlu2 %1464 }
 0x2d9   :  { %v1485_v18 = vsub.f32 %v3201_v10, %v1465_v62 }
 0x2db   :  { %v3272_v9 = vpop.eup %2247  ;;  %v1512_v28 = vmul.f32 1.442695, %v1485_v18 }
 0x2dc   :  { %1542 = vadd.xlane.f32.xlu2 %v3272_v9 }
 0x2dd   :  { %2249 = vpow2.f32 %v1512_v28 }
 0x2e3   :  { %v3275_v51 = vpop.eup %2249 }
 0x2e4   :  { %1544 = vadd.xlane.f32.xlu0 %v3275_v51 }
 0x2f1   :  { %v1467_v30 = vpop.xlane.xlu0 %1466 }
 0x2f2   :  { %v1486_v43 = vsub.f32 %v3208_v22, %v1467_v30 }
 0x2f4   :  { %v1514_v32 = vmul.f32 1.442695, %v1486_v43 }
 0x2f6   :  { %2251 = vpow2.f32 %v1514_v32 }
 0x2f9   :  { %v1469_v49 = vpop.xlane.xlu1 %1468 }
 0x2fa   :  { %v1487_v37 = vsub.f32 %v3214_v13, %v1469_v49 }
 0x2fc   :  { %v3280_v33 = vpop.eup %2251  ;;  %v1516_v10 = vmul.f32 1.442695, %v1487_v37 }
 0x2fd   :  { %1546 = vadd.xlane.f32.xlu1 %v3280_v33 }
 0x2fe   :  { %2253 = vpow2.f32 %v1516_v10 }
 0x304   :  { %v3283_v61 = vpop.eup %2253 }
 0x305   :  { %1548 = vadd.xlane.f32.xlu2 %v3283_v61 }
 0x30a   :  { %v1523_v17 = vpop.xlane.xlu1 %1522 }
 0x30b   :  { %2255 = vrcp.f32 %v1523_v17 }
 0x311   :  { %v1471_v24 = vpop.xlane.xlu2 %1470  ;;  %v2256_v42 = vpop.eup %2255 }
 0x312   :  { %v1488_v22 = vsub.f32 %v3227_v41, %v1471_v24  ;;  %v1570_v4 = vmul.f32 %v2256_v42, %v3220_v45 }
 0x314   :  { %v1518_v39 = vmul.f32 1.442695, %v1488_v22  ;;  %v1529_v13 = vpop.xlane.xlu1 %1528  ;;  %1586 = vst [vmem:[#allocation8] sm:$0xff] %v1570_v4 }
 0x315   :  { %2257 = vrcp.f32 %v1529_v13 }
 0x316   :  { %2259 = vpow2.f32 %v1518_v39 }
 0x319   :  { %v1473_v46 = vpop.xlane.xlu0 %1472  ;;  %v1525_v38 = vpop.xlane.xlu2 %1524 }
 0x31a   :  { %v1489_v26 = vsub.f32 %v3240_v3, %v1473_v46  ;;  %2261 = vrcp.f32 %v1525_v38  ;;  %v1603_v3 = vsel %vm1602_vm9, %v1570_v4, -inf }
 0x31b   :  { %v2258_v58 = vpop.eup %2257 }
 0x31c   :  { %v3289_v48 = vpop.eup %2259  ;;  %v3292_v34 = vmul.f32 %v2258_v58, %v3231_v7  ;;  %v1520_v5 = vmul.f32 1.442695, %v1489_v26 }
 0x31d   :  { %1550 = vadd.xlane.f32.xlu0 %v3289_v48 }
 0x31e   :  { %1589 = vst [vmem:[#allocation8 + $0x18] sm:$0xff] %v3292_v34  ;;  %2263 = vpow2.f32 %v1520_v5  ;;  %v1613_v28 = vsel %vm1602_vm9, %v3292_v34, -inf }
 0x320   :  { %v2262_v45 = vpop.eup %2261 }
 0x321   :  { %v1571_v41 = vmul.f32 %v2262_v45, %v3236_v21  ;;  %v1527_v63 = vpop.xlane.xlu0 %1526  ;;  %v1531_v1 = vpop.xlane.xlu2 %1530 }
 0x322   :  { %2265 = vrcp.f32 %v1527_v63 }
 0x323   :  { %1587 = vst [vmem:[#allocation8 + $0x8] sm:$0xff] %v1571_v41  ;;  %v1604_v27 = vsel %vm1602_vm9, %v1571_v41, -inf  ;;  %2267 = vrcp.f32 %v1531_v1 }
 0x324   :  { %v3299_v7 = vpop.eup %2263  ;;  %v1605_v0 = vmax.f32 %v1603_v3, %v1604_v27 }
 0x325   :  { %1552 = vadd.xlane.f32.xlu1 %v3299_v7 }
 0x326   :  { %v1606_v36 = vrot.slane %v1605_v0, 4 }
 0x328   :  { %v2266_v54 = vpop.eup %2265  ;;  %v1607_v31 = vmax.f32 %v1605_v0, %v1606_v36 }
 0x329   :  { %v2268_v47 = vpop.eup %2267  ;;  %v1572_v21 = vmul.f32 %v2266_v54, %v3245_v8  ;;  %v1533_v60 = vpop.xlane.xlu0 %1532 }
 0x32a   :  { %v1608_v62 = vrot.slane %v1607_v31, 2  ;;  %v3304_v18 = vmul.f32 %v2268_v47, %v3247_v11  ;;  %2269 = vrcp.f32 %v1533_v60 }
 0x32b   :  { %1588 = vst [vmem:[#allocation8 + $0x10] sm:$0xff] %v1572_v21  ;;  %v1612_v30 = vsel %vm1602_vm9, %v1572_v21, -inf }
 0x32c   :  { %v1614_v43 = vmax.f32 %v1612_v30, %v1613_v28  ;;  %1590 = vst [vmem:[#allocation8 + $0x20] sm:$0xff] %v3304_v18  ;;  %v1609_v32 = vmax.f32 %v1607_v31, %v1608_v62  ;;  %v1621_v13 = vsel %vm1602_vm9, %v3304_v18, -inf }
 0x32e   :  { %v1615_v49 = vrot.slane %v1614_v43, 4  ;;  %v1610_v37 = vrot.slane %v1609_v32, 1 }
 0x32f   :  { %v1535_v10 = vpop.xlane.xlu1 %1534 }
 0x330   :  { %v2270_v8 = vpop.eup %2269  ;;  %v1616_v17 = vmax.f32 %v1614_v43, %v1615_v49  ;;  %2271 = vrcp.f32 %v1535_v10  ;;  %v1611_v24 = vmax.f32 %v1609_v32, %v1610_v37 }
 0x331   :  { %v1575_v11 = vmul.f32 %v2270_v8, %v3252_v19 }
 0x332   :  { %v1617_v42 = vrot.slane %v1616_v17, 2  ;;  %v1675_v22 = vsub.f32 %v1570_v4, %v1611_v24  ;;  %v1676_v39 = vsub.f32 %v1571_v41, %v1611_v24 }
 0x333   :  { %1591 = vst [vmem:[#allocation8 + $0x28] sm:$0xff] %v1575_v11  ;;  %v1622_v46 = vsel %vm1602_vm9, %v1575_v11, -inf }
 0x334   :  { %v1623_v38 = vmax.f32 %v1621_v13, %v1622_v46  ;;  %v1691_v26 = vmul.f32 1.442695, %v1675_v22  ;;  %v1693_v58 = vmul.f32 1.442695, %v1676_v39  ;;  %v1618_v5 = vmax.f32 %v1616_v17, %v1617_v42 }
 0x336   :  { %v2272_v45 = vpop.eup %2271  ;;  %v1624_v63 = vrot.slane %v1623_v38, 4  ;;  %2273 = vpow2.f32 %v1691_v26  ;;  %v1619_v1 = vrot.slane %v1618_v5, 1 }
 0x337   :  { %v3315_v3 = vmul.f32 %v2272_v45, %v3256_v56  ;;  %v1537_v19 = vpop.xlane.xlu2 %1536  ;;  %2275 = vpow2.f32 %v1693_v58 }
 0x338   :  { %v1625_v4 = vmax.f32 %v1623_v38, %v1624_v63  ;;  %2277 = vrcp.f32 %v1537_v19  ;;  %v1620_v41 = vmax.f32 %v1618_v5, %v1619_v1 }
 0x339   :  { %1592 = vst [vmem:[#allocation8 + $0x30] sm:$0xff] %v3315_v3  ;;  %v1630_v37 = vsel %vm1602_vm9, %v3315_v3, -inf }
 0x33a   :  { %v1626_v27 = vrot.slane %v1625_v4, 2  ;;  %v1677_v0 = vsub.f32 %v1572_v21, %v1620_v41  ;;  %v1678_v36 = vsub.f32 %v3292_v34, %v1620_v41 }
 0x33c   :  { %v3319_v54 = vpop.eup %2273  ;;  %v1695_v31 = vmul.f32 1.442695, %v1677_v0  ;;  %v1697_v47 = vmul.f32 1.442695, %v1678_v36  ;;  %v1627_v60 = vmax.f32 %v1625_v4, %v1626_v27 }
 0x33d   :  { %v3321_v62 = vpop.eup %2275  ;;  %v1723_v56 = vsel %vm1602_vm9, %v3319_v54, 0.0 }
 0x33e   :  { %v2278_v28 = vpop.eup %2277  ;;  %v1724_v30 = vsel %vm1602_vm9, %v3321_v62, 0.0  ;;  %2279 = vpow2.f32 %v1695_v31  ;;  %v1628_v43 = vrot.slane %v1627_v60, 1 }
 0x33f   :  { %v1577_v21 = vmul.f32 %v2278_v28, %v3260_v20  ;;  %v1539_v32 = vpop.xlane.xlu0 %1538  ;;  %v1725_v34 = vadd.f32 %v1724_v30, %v1723_v56  ;;  %2281 = vpow2.f32 %v1697_v47 }
 0x340   :  { %2283 = vrcp.f32 %v1539_v32  ;;  %v1629_v49 = vmax.f32 %v1627_v60, %v1628_v43 }
 0x341   :  { %1593 = vst [vmem:[#allocation8 + $0x38] sm:$0xff] %v1577_v21  ;;  %v1631_v10 = vsel %vm1602_vm9, %v1577_v21, -inf  ;;  %v1726_v8 = vrot.slane %v1725_v34, 4 }
 0x342   :  { %v1632_v17 = vmax.f32 %v1630_v37, %v1631_v10  ;;  %v1679_v24 = vsub.f32 %v3304_v18, %v1629_v49  ;;  %v1680_v42 = vsub.f32 %v1575_v11, %v1629_v49 }
 0x343   :  { %v1727_v22 = vadd.f32 %v1726_v8, %v1725_v34 }
 0x344   :  { %v3332_v39 = vpop.eup %2279  ;;  %v1633_v20 = vrot.slane %v1632_v17, 4  ;;  %v1699_v13 = vmul.f32 1.442695, %v1679_v24  ;;  %v1701_v46 = vmul.f32 1.442695, %v1680_v42 }
 0x345   :  { %v3334_v38 = vpop.eup %2281  ;;  %v1728_v26 = vrot.slane %v1727_v22, 2  ;;  %v1732_v58 = vsel %vm1602_vm9, %v3332_v39, 0.0 }
 0x346   :  { %v2284_v5 = vpop.eup %2283  ;;  %v1634_v45 = vmax.f32 %v1632_v17, %v1633_v20  ;;  %v1733_v63 = vsel %vm1602_vm9, %v3334_v38, 0.0  ;;  %2285 = vpow2.f32 %v1699_v13 }
 0x347   :  { %v3341_v18 = vmul.f32 %v2284_v5, %v3264_v15  ;;  %v1541_v11 = vpop.xlane.xlu1 %1540  ;;  %v1729_v1 = vadd.f32 %v1728_v26, %v1727_v22  ;;  %v1734_v19 = vadd.f32 %v1733_v63, %v1732_v58  ;;  %2287 = vpow2.f32 %v1701_v46 }
 0x348   :  { %v1635_v4 = vrot.slane %v1634_v45, 2  ;;  %2289 = vrcp.f32 %v1541_v11 }
 0x349   :  { %1594 = vst [vmem:[#allocation8 + $0x40] sm:$0xff] %v3341_v18  ;;  %v1730_v41 = vrot.slane %v1729_v1, 1  ;;  %v1735_v27 = vrot.slane %v1734_v19, 4  ;;  %v1639_v24 = vsel %vm1602_vm9, %v3341_v18, -inf }
 0x34a   :  { %v1636_v0 = vmax.f32 %v1634_v45, %v1635_v4 }
 0x34b   :  { %v1731_v36 = vadd.f32 %v1730_v41, %v1729_v1  ;;  %v1736_v31 = vadd.f32 %v1735_v27, %v1734_v19 }
 0x34c   :  { %v3344_v47 = vpop.eup %2285  ;;  %v1637_v60 = vrot.slane %v1636_v0, 1 }
 0x34d   :  { %v3346_v56 = vpop.eup %2287  ;;  %2291 = vrcp.f32 %v1731_v36  ;;  %v1737_v15 = vrot.slane %v1736_v31, 2  ;;  %v1741_v28 = vsel %vm1602_vm9, %v3344_v47, 0.0 }
 0x34e   :  { %v2290_v30 = vpop.eup %2289  ;;  %v1742_v43 = vsel %vm1602_vm9, %v3346_v56, 0.0  ;;  %v1638_v32 = vmax.f32 %v1636_v0, %v1637_v60 }
 0x34f   :  { %v1579_v34 = vmul.f32 %v2290_v30, %v3268_v50  ;;  %v1543_v49 = vpop.xlane.xlu2 %1542  ;;  %v1738_v37 = vadd.f32 %v1737_v15, %v1736_v31  ;;  %v1743_v10 = vadd.f32 %v1742_v43, %v1741_v28 }
 0x350   :  { %2293 = vrcp.f32 %v1543_v49  ;;  %v1681_v8 = vsub.f32 %v3315_v3, %v1638_v32  ;;  %v1682_v17 = vsub.f32 %v1577_v21, %v1638_v32 }
 0x351   :  { %1595 = vst [vmem:[#allocation8 + $0x48] sm:$0xff] %v1579_v34  ;;  %v1640_v42 = vsel %vm1602_vm9, %v1579_v34, -inf  ;;  %v1739_v22 = vrot.slane %v1738_v37, 1  ;;  %v1744_v20 = vrot.slane %v1743_v10, 4 }
 0x352   :  { %v1641_v13 = vmax.f32 %v1639_v24, %v1640_v42  ;;  %v1703_v46 = vmul.f32 1.442695, %v1681_v8  ;;  %v1705_v26 = vmul.f32 1.442695, %v1682_v17 }
 0x353   :  { %v2292_v58 = vpop.eup %2291  ;;  %v1740_v50 = vadd.f32 %v1739_v22, %v1738_v37  ;;  %v1745_v5 = vadd.f32 %v1744_v20, %v1743_v10 }
 0x354   :  { %v1642_v45 = vrot.slane %v1641_v13, 4  ;;  %v1804_v63 = vmul.f32 %v2292_v58, %v3321_v62  ;;  %v1803_v3 = vmul.f32 %v2292_v58, %v3319_v54  ;;  %2295 = vpow2.f32 %v1703_v46 }
 0x355   :  { %2297 = vrcp.f32 %v1740_v50  ;;  %v1746_v21 = vrot.slane %v1745_v5, 2 }
 0x356   :  { %v2294_v11 = vpop.eup %2293  ;;  %v1643_v1 = vmax.f32 %v1641_v13, %v1642_v45  ;;  %1826 = vperm.xlu0 %2182, %v1804_v63   ;;  %1821 = vperm.xlu2 %2180, %v1803_v3   ;;  %2299 = vpow2.f32 %v1705_v26 }
 0x357   :  { %v3360_v19 = vmul.f32 %v2294_v11, %v3272_v9  ;;  %v1545_v4 = vpop.xlane.xlu0 %1544  ;;  %v1747_v41 = vadd.f32 %v1746_v21, %v1745_v5 }
 0x358   :  { %v1644_v27 = vrot.slane %v1643_v1, 2  ;;  %2301 = vrcp.f32 %v1545_v4 }
 0x359   :  { %1596 = vst [vmem:[#allocation8 + $0x50] sm:$0xff] %v3360_v19  ;;  %v1748_v62 = vrot.slane %v1747_v41, 1  ;;  %v1648_v42 = vsel %vm1602_vm9, %v3360_v19, -inf }
 0x35a   :  { %v2296_v0 = vpop.eup %2295  ;;  %v1645_v54 = vmax.f32 %v1643_v1, %v1644_v27 }
 0x35b   :  { %v2298_v36 = vpop.eup %2297  ;;  %v1749_v31 = vadd.f32 %v1748_v62, %v1747_v41  ;;  %v1750_v60 = vsel %vm1602_vm9, %v2296_v0, 0.0 }
 0x35c   :  { %v2300_v15 = vpop.eup %2299  ;;  %v1646_v28 = vrot.slane %v1645_v54, 1  ;;  %v1805_v30 = vmul.f32 %v2298_v36, %v3332_v39  ;;  %v1806_v9 = vmul.f32 %v2298_v36, %v3334_v38 }
 0x35d   :  { %2303 = vrcp.f32 %v1749_v31  ;;  %v1751_v43 = vsel %vm1602_vm9, %v2300_v15, 0.0 }
 0x35e   :  { %v2302_v32 = vpop.eup %2301  ;;  %v1647_v49 = vmax.f32 %v1645_v54, %v1646_v28  ;;  %1831 = vperm.xlu1 %2181, %v1805_v30   ;;  %1836 = vperm.xlu0 %2182, %v1806_v9   ;;  %v1752_v37 = vadd.f32 %v1751_v43, %v1750_v60 }
 0x35f   :  { %v1581_v10 = vmul.f32 %v2302_v32, %v3275_v51 }
 0x360   :  { %v1684_v8 = vsub.f32 %v1579_v34, %v1647_v49  ;;  %v1753_v17 = vrot.slane %v1752_v37, 4  ;;  %v1683_v24 = vsub.f32 %v3341_v18, %v1647_v49 }
 0x361   :  { %1597 = vst [vmem:[#allocation8 + $0x58] sm:$0xff] %v1581_v10  ;;  %v1649_v39 = vsel %vm1602_vm9, %v1581_v10, -inf }
 0x362   :  { %v1709_v38 = vmul.f32 1.442695, %v1684_v8  ;;  %v1650_v22 = vmax.f32 %v1648_v42, %v1649_v39  ;;  %v1754_v20 = vadd.f32 %v1753_v17, %v1752_v37  ;;  %v1707_v13 = vmul.f32 1.442695, %v1683_v24 }
 0x363   :  { %v2304_v46 = vpop.eup %2303 }
 0x364   :  { %2305 = vpow2.f32 %v1709_v38  ;;  %v1651_v26 = vrot.slane %v1650_v22, 4  ;;  %v1808_v58 = vmul.f32 %v2304_v46, %v3346_v56  ;;  %v1807_v51 = vmul.f32 %v2304_v46, %v3344_v47 }
 0x365   :  { %v1755_v34 = vrot.slane %v1754_v20, 2  ;;  %2307 = vpow2.f32 %v1707_v13 }
 0x366   :  { %v1652_v18 = vmax.f32 %v1650_v22, %v1651_v26  ;;  %1846 = vperm.xlu0 %2182, %v1808_v58   ;;  %1841 = vperm.xlu2 %2180, %v1807_v51  }
 0x367   :  { %v1756_v50 = vadd.f32 %v1755_v34, %v1754_v20  ;;  %v769_v34 = vpop.f32.mrf.mxu1 }
 0x368   :  { %v1653_v5 = vrot.slane %v1652_v18, 2 }
 0x369   :  { %v1757_v45 = vrot.slane %v1756_v50, 1 }
 0x36a   :  { %v2306_v63 = vpop.eup %2305  ;;  %v1654_v3 = vmax.f32 %v1652_v18, %v1653_v5 }
 0x36b   :  { %v2308_v21 = vpop.eup %2307  ;;  %v1758_v11 = vadd.f32 %v1757_v45, %v1756_v50  ;;  %v1760_v1 = vsel %vm1602_vm9, %v2306_v63, 0.0 }
 0x36c   :  { %v1759_v4 = vsel %vm1602_vm9, %v2308_v21, 0.0  ;;  %v1655_v41 = vrot.slane %v1654_v3, 1 }
 0x36d   :  { %2309 = vrcp.f32 %v1758_v11  ;;  %v1761_v56 = vadd.f32 %v1760_v1, %v1759_v4 }
 0x36e   :  { %v1656_v47 = vmax.f32 %v1654_v3, %v1655_v41 }
 0x36f   :  { %v1762_v27 = vrot.slane %v1761_v56, 4  ;;  %v3383_v41 = vpop.f32.mrf.mxu1 }
 0x370   :  { %v1547_v62 = vpop.xlane.xlu1 %1546  ;;  %v1685_v54 = vsub.f32 %v3360_v19, %v1656_v47  ;;  %v1686_v36 = vsub.f32 %v1581_v10, %v1656_v47 }
 0x371   :  { %2311 = vrcp.f32 %v1547_v62  ;;  %v1763_v31 = vadd.f32 %v1762_v27, %v1761_v56 }
 0x372   :  { %v1711_v60 = vmul.f32 1.442695, %v1685_v54  ;;  %v1713_v28 = vmul.f32 1.442695, %v1686_v36 }
 0x373   :  { %v2310_v30 = vpop.eup %2309  ;;  %v1764_v9 = vrot.slane %v1763_v31, 2 }
 0x374   :  { %v1810_v43 = vmul.f32 %v2310_v30, %v2300_v15  ;;  %v1809_v32 = vmul.f32 %v2310_v30, %v2296_v0  ;;  %2313 = vpow2.f32 %v1711_v60 }
 0x375   :  { %v1765_v49 = vadd.f32 %v1764_v9, %v1763_v31  ;;  %2315 = vpow2.f32 %v1713_v28 }
 0x376   :  { %1856 = vperm.xlu1 %2181, %v1810_v43   ;;  %1851 = vperm.xlu2 %2180, %v1809_v32  }
 0x377   :  { %v2312_v37 = vpop.eup %2311  ;;  %v1766_v8 = vrot.slane %v1765_v49, 1  ;;  %v3385_v28 = vpop.f32.mrf.mxu1 }
 0x378   :  { %v1582_v17 = vmul.f32 %v2312_v37, %v3280_v33  ;;  %v1549_v24 = vpop.xlane.xlu2 %1548 }
 0x379   :  { %2317 = vrcp.f32 %v1549_v24  ;;  %v1767_v19 = vadd.f32 %v1766_v8, %v1765_v49 }
 0x37a   :  { %v2314_v10 = vpop.eup %2313  ;;  %1598 = vst [vmem:[#allocation8 + $0x60] sm:$0xff] %v1582_v17  ;;  %v1657_v33 = vsel %vm1602_vm9, %v1582_v17, -inf }
 0x37b   :  { %v2316_v42 = vpop.eup %2315  ;;  %2319 = vrcp.f32 %v1767_v19  ;;  %v1768_v39 = vsel %vm1602_vm9, %v2314_v10, 0.0 }
 0x37c   :  { %v1769_v0 = vsel %vm1602_vm9, %v2316_v42, 0.0 }
 0x37d   :  { %v1770_v15 = vadd.f32 %v1769_v0, %v1768_v39 }
 0x37f   :  { %v2318_v38 = vpop.eup %2317  ;;  %v1771_v22 = vrot.slane %v1770_v15, 4  ;;  %v3390_v19 = vpop.f32.mrf.mxu1 }
 0x380   :  { %v1583_v20 = vmul.f32 %v2318_v38, %v3283_v61 }
 0x381   :  { %v2320_v13 = vpop.eup %2319  ;;  %v1772_v46 = vadd.f32 %v1771_v22, %v1770_v15 }
 0x382   :  { %1599 = vst [vmem:[#allocation8 + $0x68] sm:$0xff] %v1583_v20  ;;  %v1658_v26 = vsel %vm1602_vm9, %v1583_v20, -inf  ;;  %v1811_v58 = vmul.f32 %v2320_v13, %v2308_v21  ;;  %v1812_v51 = vmul.f32 %v2320_v13, %v2306_v63 }
 0x383   :  { %v1659_v18 = vmax.f32 %v1657_v33, %v1658_v26  ;;  %v1773_v50 = vrot.slane %v1772_v46, 2 }
 0x384   :  { %1861 = vperm.xlu0 %2182, %v1811_v58   ;;  %1866 = vperm.xlu2 %2180, %v1812_v51  }
 0x385   :  { %v1660_v5 = vrot.slane %v1659_v18, 4  ;;  %v1774_v45 = vadd.f32 %v1773_v50, %v1772_v46 }
 0x387   :  { %v1661_v3 = vmax.f32 %v1659_v18, %v1660_v5  ;;  %v1775_v11 = vrot.slane %v1774_v45, 1  ;;  %v779_v13 = vpop.f32.mrf.mxu1 }
 0x389   :  { %v1662_v1 = vrot.slane %v1661_v3, 2  ;;  %v1776_v61 = vadd.f32 %v1775_v11, %v1774_v45 }
 0x38b   :  { %2321 = vrcp.f32 %v1776_v61  ;;  %v1663_v4 = vmax.f32 %v1661_v3, %v1662_v1 }
 0x38d   :  { %v1664_v56 = vrot.slane %v1663_v4, 1 }
 0x38f   :  { %v1665_v47 = vmax.f32 %v1663_v4, %v1664_v56  ;;  %v781_v45 = vpop.f32.mrf.mxu1 }
 0x390   :  { %v1551_v27 = vpop.xlane.xlu0 %1550 }
 0x391   :  { %v2322_v21 = vpop.eup %2321  ;;  %2323 = vrcp.f32 %v1551_v27  ;;  %v1687_v63 = vsub.f32 %v1582_v17, %v1665_v47  ;;  %v1688_v62 = vsub.f32 %v1583_v20, %v1665_v47 }
 0x392   :  { %v1814_v54 = vmul.f32 %v2322_v21, %v2316_v42  ;;  %v1813_v36 = vmul.f32 %v2322_v21, %v2314_v10 }
 0x393   :  { %v1715_v31 = vmul.f32 1.442695, %v1687_v63  ;;  %v1717_v60 = vmul.f32 1.442695, %v1688_v62 }
 0x394   :  { %1876 = vperm.xlu0 %2182, %v1814_v54   ;;  %1871 = vperm.xlu1 %2181, %v1813_v36   ;;  %v818_v36 = vmul.f32 %v779_v13, %v2902_v52 }
 0x395   :  { %2325 = vpow2.f32 %v1715_v31 }
 0x396   :  { %2327 = vpow2.f32 %v1717_v60 }
 0x397   :  { %v2324_v30 = vpop.eup %2323  ;;  %v784_v63 = vpop.f32.mrf.mxu1 }
 0x398   :  { %v1584_v9 = vmul.f32 %v2324_v30, %v3289_v48  ;;  %v1553_v43 = vpop.xlane.xlu1 %1552  ;;  %v822_v52 = vmul.f32 %v784_v63, %v2906_v29 }
 0x399   :  { %2329 = vrcp.f32 %v1553_v43 }
 0x39a   :  { %1600 = vst [vmem:[#allocation8 + $0x70] sm:$0xff] %v1584_v9  ;;  %v1666_v39 = vsel %vm1602_vm9, %v1584_v9, -inf }
 0x39b   :  { %v2326_v32 = vpop.eup %2325 }
 0x39c   :  { %v2328_v49 = vpop.eup %2327  ;;  %v1777_v37 = vsel %vm1602_vm9, %v2326_v32, 0.0 }
 0x39d   :  { %v1778_v8 = vsel %vm1602_vm9, %v2328_v49, 0.0 }
 0x39e   :  { %v1779_v17 = vadd.f32 %v1778_v8, %v1777_v37  ;;  %v812_v37 = vmul.f32 %v3383_v41, %v2772_v2  ;;  %v814_v2 = vmul.f32 %v3385_v28, %v2831_v35  ;;  %v820_v35 = vmul.f32 %v781_v45, %v2919_v53 }
 0x39f   :  { %v2330_v24 = vpop.eup %2329 }
 0x3a0   :  { %v1585_v10 = vmul.f32 %v2330_v24, %v3299_v7  ;;  %v1780_v42 = vrot.slane %v1779_v17, 4  ;;  %v810_v7 = vmul.f32 %v769_v34, %v2774_v6 }
 0x3a2   :  { %1601 = vst [vmem:[#allocation8 + $0x78] sm:$0xff] %v1585_v10  ;;  %v1667_v48 = vsel %vm1602_vm9, %v1585_v10, -inf  ;;  %v1781_v0 = vadd.f32 %v1780_v42, %v1779_v17  ;;  %v816_v42 = vmul.f32 %v3390_v19, %v2835_v25 }
 0x3a3   :  { %v1668_v15 = vmax.f32 %v1666_v39, %v1667_v48  ;;  %1943 = dma.vmem_to_hbm [thread:$0]  %s1936_s11, 2048, %s1938_s30, [#allocation4], %s2471_s21, %s2471_s21, %s2472_s22  }
 0x3a4   :  { %v1782_v38 = vrot.slane %v1781_v0, 2 }
 0x3a5   :  { %v1669_v22 = vrot.slane %v1668_v15, 4 }
 0x3a6   :  { %v1783_v20 = vadd.f32 %v1782_v38, %v1781_v0 }
 0x3a7   :  { %v1670_v46 = vmax.f32 %v1668_v15, %v1669_v22 }
 0x3a8   :  { %v1784_v33 = vrot.slane %v1783_v20, 1 }
 0x3a9   :  { %v1671_v26 = vrot.slane %v1670_v46, 2 }
 0x3aa   :  { %v1785_v58 = vadd.f32 %v1784_v33, %v1783_v20 }
 0x3ab   :  { %v1672_v51 = vmax.f32 %v1670_v46, %v1671_v26 }
 0x3ac   :  { %2331 = vrcp.f32 %v1785_v58 }
 0x3ad   :  { %v1673_v18 = vrot.slane %v1672_v51, 1 }
 0x3af   :  { %v1674_v50 = vmax.f32 %v1672_v51, %v1673_v18 }
 0x3b0   :  { %v1822_v5 = vpop.permute.xlu2 %1821 }
 0x3b1   :  { %v1690_v3 = vsub.f32 %v1585_v10, %v1674_v50  ;;  %v1899_v11 = vmul.f32 %v1822_v5, %v810_v7  ;;  %v1689_v1 = vsub.f32 %v1584_v9, %v1674_v50 }
 0x3b2   :  { %v2332_v61 = vpop.eup %2331 }
 0x3b3   :  { %v1721_v4 = vmul.f32 1.442695, %v1690_v3  ;;  %1915 = vst [vmem:[#allocation9] sm:$0xff] %v1899_v11  ;;  %v1816_v56 = vmul.f32 %v2332_v61, %v2328_v49  ;;  %v1815_v47 = vmul.f32 %v2332_v61, %v2326_v32  ;;  %v1719_v27 = vmul.f32 1.442695, %v1689_v1  ;;  %v786_v32 = vpop.f32.mrf.mxu1 }
 0x3b4   :  { %v824_v58 = vmul.f32 %v786_v32, %v2941_v40 }
 0x3b5   :  { %2333 = vpow2.f32 %v1721_v4  ;;  %1886 = vperm.xlu1 %2181, %v1816_v56   ;;  %1881 = vperm.xlu2 %2180, %v1815_v47  }
 0x3b6   :  { %2335 = vpow2.f32 %v1719_v27 }
 0x3bb   :  { %v2334_v21 = vpop.eup %2333  ;;  %v789_v41 = vpop.f32.mrf.mxu1 }
 0x3bc   :  { %v2336_v62 = vpop.eup %2335  ;;  %v1787_v6 = vsel %vm1602_vm9, %v2334_v21, 0.0  ;;  %v826_v7 = vmul.f32 %v789_v41, %v2954_v57 }
 0x3bd   :  { %v1786_v34 = vsel %vm1602_vm9, %v2336_v62, 0.0 }
 0x3be   :  { %v1788_v54 = vadd.f32 %v1787_v6, %v1786_v34 }
 0x3c0   :  { %v1842_v31 = vpop.permute.xlu2 %1841  ;;  %v1789_v60 = vrot.slane %v1788_v54, 4 }
 0x3c1   :  { %v1903_v30 = vmul.f32 %v1842_v31, %v818_v36 }
 0x3c2   :  { %v1790_v9 = vadd.f32 %v1789_v60, %v1788_v54 }
 0x3c3   :  { %1919 = vst [vmem:[#allocation9 + $0x20] sm:$0xff] %v1903_v30  ;;  %v791_v28 = vpop.f32.mrf.mxu1 }
 0x3c4   :  { %v1791_v43 = vrot.slane %v1790_v9, 2  ;;  %v828_v25 = vmul.f32 %v791_v28, %v2984_v55 }
 0x3c6   :  { %v1792_v49 = vadd.f32 %v1791_v43, %v1790_v9 }
 0x3c8   :  { %v1827_v8 = vpop.permute.xlu0 %1826  ;;  %v1793_v17 = vrot.slane %v1792_v49, 1 }
 0x3c9   :  { %v1900_v24 = vmul.f32 %v1827_v8, %v812_v37 }
 0x3ca   :  { %v1794_v10 = vadd.f32 %v1793_v17, %v1792_v49 }
 0x3cb   :  { %1916 = vst [vmem:[#allocation9 + $0x8] sm:$0xff] %v1900_v24  ;;  %v794_v3 = vpop.f32.mrf.mxu1 }
 0x3cc   :  { %2337 = vrcp.f32 %v1794_v10  ;;  %v830_v45 = vmul.f32 %v794_v3, %v3006_v16 }
 0x3d0   :  { %v1852_v39 = vpop.permute.xlu2 %1851  ;;  %v1832_v48 = vpop.permute.xlu1 %1831 }
 0x3d1   :  { %v1905_v0 = vmul.f32 %v1852_v39, %v822_v52  ;;  %v1901_v15 = vmul.f32 %v1832_v48, %v814_v2  ;;  %v1837_v38 = vpop.permute.xlu0 %1836 }
 0x3d2   :  { %v2338_v22 = vpop.eup %2337  ;;  %v1902_v20 = vmul.f32 %v1837_v38, %v816_v42 }
 0x3d3   :  { %1921 = vst [vmem:[#allocation9 + $0x30] sm:$0xff] %v1905_v0  ;;  %v1817_v13 = vmul.f32 %v2338_v22, %v2336_v62  ;;  %v1818_v46 = vmul.f32 %v2338_v22, %v2334_v21  ;;  %v796_v53 = vpop.f32.mrf.mxu1 }
 0x3d4   :  { %1917 = vst [vmem:[#allocation9 + $0x10] sm:$0xff] %v1901_v15  ;;  %v832_v11 = vmul.f32 %v796_v53, %v3004_v14 }
 0x3d5   :  { %1918 = vst [vmem:[#allocation9 + $0x18] sm:$0xff] %v1902_v20  ;;  %1891 = vperm.xlu0 %2182, %v1817_v13   ;;  %1896 = vperm.xlu2 %2180, %v1818_v46  }
 0x3d9   :  { %v1847_v29 = vpop.permute.xlu0 %1846 }
 0x3da   :  { %v1904_v33 = vmul.f32 %v1847_v29, %v820_v35 }
 0x3db   :  { %v799_v40 = vpop.f32.mrf.mxu1 }
 0x3dc   :  { %1920 = vst [vmem:[#allocation9 + $0x28] sm:$0xff] %v1904_v33  ;;  %v834_v56 = vmul.f32 %v799_v40, %v3028_v23 }
 0x3de   :  { %v1867_v19 = vpop.permute.xlu2 %1866 }
 0x3df   :  { %v1908_v26 = vmul.f32 %v1867_v19, %v828_v25 }
 0x3e1   :  { %1924 = vst [vmem:[#allocation9 + $0x48] sm:$0xff] %v1908_v26 }
 0x3e3   :  { %v801_v27 = vpop.f32.mrf.mxu1 }
 0x3e4   :  { %v836_v63 = vmul.f32 %v801_v27, %v3035_v59 }
 0x3e8   :  { %v1857_v51 = vpop.permute.xlu1 %1856 }
 0x3e9   :  { %v1906_v18 = vmul.f32 %v1857_v51, %v824_v58 }
 0x3eb   :  { %1922 = vst [vmem:[#allocation9 + $0x38] sm:$0xff] %v1906_v18  ;;  %v804_v21 = vpop.f32.mrf.mxu1 }
 0x3ec   :  { %v838_v23 = vmul.f32 %v804_v21, %v3067_v44 }
 0x3f3   :  { %v806_v14 = vpop.f32.mrf.mxu1 }
 0x3f4   :  { %v840_v6 = vmul.f32 %v806_v14, %v3087_v12 }
 0x3f6   :  { %v1862_v50 = vpop.permute.xlu0 %1861 }
 0x3f7   :  { %v1907_v5 = vmul.f32 %v1862_v50, %v826_v7 }
 0x3f9   :  { %1923 = vst [vmem:[#allocation9 + $0x40] sm:$0xff] %v1907_v5 }
 0x406   :  { %v1877_v55 = vpop.permute.xlu0 %1876  ;;  %v1872_v1 = vpop.permute.xlu1 %1871 }
 0x407   :  { %v1910_v61 = vmul.f32 %v1877_v55, %v832_v11  ;;  %v1909_v4 = vmul.f32 %v1872_v1, %v830_v45 }
 0x409   :  { %1926 = vst [vmem:[#allocation9 + $0x58] sm:$0xff] %v1910_v61 }
 0x40a   :  { %1925 = vst [vmem:[#allocation9 + $0x50] sm:$0xff] %v1909_v4 }
 0x40f   :  { %v1882_v47 = vpop.permute.xlu2 %1881 }
 0x410   :  { %v1911_v57 = vmul.f32 %v1882_v47, %v834_v56 }
 0x412   :  { %1927 = vst [vmem:[#allocation9 + $0x60] sm:$0xff] %v1911_v57 }
 0x427   :  { %v1887_v62 = vpop.permute.xlu1 %1886 }
 0x428   :  { %v1912_v16 = vmul.f32 %v1887_v62, %v836_v63 }
 0x42a   :  { %1928 = vst [vmem:[#allocation9 + $0x68] sm:$0xff] %v1912_v16 }
 0x42f   :  { %v1897_v34 = vpop.permute.xlu2 %1896 }
 0x430   :  { %v1914_v54 = vmul.f32 %v1897_v34, %v840_v6 }
 0x432   :  { %1930 = vst [vmem:[#allocation9 + $0x78] sm:$0xff] %v1914_v54 }
 0x447   :  { %v1892_v36 = vpop.permute.xlu0 %1891 }
 0x448   :  { %v1913_v31 = vmul.f32 %v1892_v36, %v838_v23 }
 0x44a   :  { %1929 = vst [vmem:[#allocation9 + $0x70] sm:$0xff] %v1913_v31 }
 0x44b   :  { %1956 = dma.vmem_to_hbm [thread:$0]  %s1949_s12, 2048, %s1951_s15, [#allocation10], %s2471_s21, %s2471_s21, %s2472_s22  }
 0x44c   :  { %2463 = dma.done.wait [#allocation4], 2048  }
 0x44d   :  { %2464 = vsyncadd [#allocation4], 4294965248 }
 0x44e   :  { %2465 = dma.done.wait [#allocation10], 2048  }
 0x44f   :  { %2466 = vsyncadd [#allocation10], 4294965248 }
 0x450   :  { %1965 = vsyncpa [#allocation3], 1 }
 0x451   :  { %1966 = vsyncpa [#allocation6], 1 }
 0x452   :  { %1967 = vsyncpa [#allocation4], 1 }
 0x453   :  { %1968 = vsyncpa [#allocation10], 1 }

</bundles_post_ra>
